<compile_context>
chip_gen: v7x
topology: tpu7x:2x2x1
jax: 0.10.0
libtpu: 0.0.40
codegen_flags: <defaults>
</compile_context>

<pallas_src>
import functools

import jax
import jax.numpy as jnp
from jax import lax
from jax.experimental import pallas as pl
from jax.experimental.pallas import tpu as pltpu


# ----------------------------- Pallas kernel --------------------------------
#
# Packed vector rows (vec_ref, shape (10, E)):
#   0: sa_bo   1: ca_bq*scale   2: ca_bo   3: ffn_b2
#   4: ln1_g   5: ln1_b   6: ln2_g   7: ln2_b   8: ln3_g   9: ln3_b

def _decoder_layer_kernel(N, L, S, nhead,
                          x_ref, enc_ref,
                          wqkv_s_ref, bqkv_s_ref, wo_s_ref,
                          wq_c_ref, wkv_c_ref, bkv_c_ref, wo_c_ref,
                          w1_ref, b1_ref, w2_ref, vec_ref,
                          o_ref):
    E = x_ref.shape[-1]
    hd = E // nhead
    f32 = jnp.float32

    x2 = x_ref[...]        # (N*L, E) slab
    enc2 = enc_ref[...]    # (N*S, E) slab
    vec = vec_ref[...]     # (10, E)

    def row(i):
        return vec[i:i + 1, :]            # (1, E), broadcasts over rows

    def to_heads(t2, T):
        # (N*T, E) -> (nhead*N, T, hd): static lane slices + major-axis concat.
        t3 = t2.reshape(N, T, E)
        return jnp.concatenate(
            [t3[:, :, h * hd:(h + 1) * hd] for h in range(nhead)], axis=0)

    def attention(qh, kh, vh):
        # One batched einsum over all (head, batch) pairs for scores and one
        # for context (single leading batch dim: the well-supported pattern).
        s = jnp.einsum('bld,bsd->bls', qh, kh, preferred_element_type=f32)
        s = s - jnp.max(s, axis=-1, keepdims=True)
        p = jnp.exp(s)
        p = p * pl.reciprocal(jnp.sum(p, axis=-1, keepdims=True), approx=True)
        ctx = jnp.einsum('bls,bsd->bld', p, vh, preferred_element_type=f32)
        # (nhead*N, L, hd) -> (N*L, E): merge heads back onto the lane dim so
        # the output projection is a single dense matmul.
        return jnp.concatenate(
            [ctx[h * N:(h + 1) * N] for h in range(nhead)], axis=-1
        ).reshape(N * L, E)

    def layer_norm(y2, gi, bi):
        mu = jnp.mean(y2, axis=-1, keepdims=True)
        var = jnp.mean((y2 - mu) ** 2, axis=-1, keepdims=True)
        return (y2 - mu) * lax.rsqrt(var + 1e-5) * row(gi) + row(bi)

    # ---- self-attention: fused QKV projection (one (N*L,E)@(E,3E) matmul) ----
    qkv = jnp.dot(x2, wqkv_s_ref[...], preferred_element_type=f32) + bqkv_s_ref[...]
    ctx = attention(to_heads(qkv[:, :E], L),
                    to_heads(qkv[:, E:2 * E], L),
                    to_heads(qkv[:, 2 * E:], L))
    sa = jnp.dot(ctx, wo_s_ref[...], preferred_element_type=f32) + row(0)
    y = layer_norm(x2 + sa, 4, 5)

    # ---- cross-attention: fused K|V projection on the encoder slab ----------
    q = jnp.dot(y, wq_c_ref[...], preferred_element_type=f32) + row(1)
    kv = jnp.dot(enc2, wkv_c_ref[...], preferred_element_type=f32) + bkv_c_ref[...]
    ctx = attention(to_heads(q, L),
                    to_heads(kv[:, :E], S),
                    to_heads(kv[:, E:], S))
    ca = jnp.dot(ctx, wo_c_ref[...], preferred_element_type=f32) + row(2)
    y = layer_norm(y + ca, 6, 7)

    # ---- feed-forward --------------------------------------------------------
    h = jnp.maximum(
        jnp.dot(y, w1_ref[...], preferred_element_type=f32) + b1_ref[...], 0.0)
    f = jnp.dot(h, w2_ref[...], preferred_element_type=f32) + row(3)
    y = layer_norm(y + f, 8, 9)

    o_ref[...] = y


def transformer_decoder_layer(x, encoder_out, params, nhead):
    # x: (L, N, E), encoder_out: (S, N, E) — PyTorch (seq, batch, d_model).
    L, N, E = x.shape
    S = encoder_out.shape[0]
    F = params["ffn_w1"].shape[0]
    hd = E // nhead
    scale = 1.0 / float(hd) ** 0.5

    x2 = jnp.transpose(x, (1, 0, 2)).reshape(N * L, E)            # (N*L, E)
    enc2 = jnp.transpose(encoder_out, (1, 0, 2)).reshape(N * S, E)  # (N*S, E)

    # Pre-transpose to (in, out) layout; fold the attention scale into Wq/bq;
    # fuse QKV (self) and KV (cross) along the output/lane dim.
    w_in_s = params["sa_in_w"]                                      # (3E, E)
    w_qkv_s = jnp.concatenate(
        [w_in_s[:E].T * scale, w_in_s[E:2 * E].T, w_in_s[2 * E:].T], axis=1)  # (E, 3E)
    b_qkv_s = jnp.concatenate(
        [params["sa_in_b"][:E] * scale, params["sa_in_b"][E:]], axis=0
    ).reshape(1, 3 * E)
    wo_s = params["sa_out_w"].T                                     # (E, E)

    w_in_c = params["ca_in_w"]
    w_q_c = w_in_c[:E].T * scale                                    # (E, E)
    w_kv_c = jnp.concatenate([w_in_c[E:2 * E].T, w_in_c[2 * E:].T], axis=1)  # (E, 2E)
    b_kv_c = params["ca_in_b"][E:].reshape(1, 2 * E)
    wo_c = params["ca_out_w"].T                                     # (E, E)

    w1 = params["ffn_w1"].T                                         # (E, F)
    b1 = params["ffn_b1"].reshape(1, F)
    w2 = params["ffn_w2"].T                                         # (F, E)

    vec = jnp.stack([
        params["sa_out_b"],
        params["ca_in_b"][:E] * scale,
        params["ca_out_b"],
        params["ffn_b2"],
        params["ln1_g"], params["ln1_b"],
        params["ln2_g"], params["ln2_b"],
        params["ln3_g"], params["ln3_b"],
    ], axis=0)                                                      # (10, E)

    vspec = pl.BlockSpec(memory_space=pltpu.MemorySpace.VMEM)
    out = pl.pallas_call(
        functools.partial(_decoder_layer_kernel, N, L, S, nhead),
        out_shape=jax.ShapeDtypeStruct((N * L, E), jnp.float32),
        in_specs=[vspec] * 13,
        out_specs=vspec,
    )(x2, enc2, w_qkv_s, b_qkv_s, wo_s, w_q_c, w_kv_c, b_kv_c, wo_c,
      w1, b1, w2, vec)

    return jnp.transpose(out.reshape(N, L, E), (1, 0, 2))           # (L, N, E)


# --------------------------- pure-JAX reference ------------------------------

def _linear(x, w, b):
    # x: (T, in), w: (out, in) [PyTorch Linear layout], b: (out,)
    return lax.dot_general(x, w, (((1,), (1,)), ((), ())),
                           preferred_element_type=jnp.float32) + b


def _layer_norm_ref(x, g, b, eps=1e-5):
    mu = jnp.mean(x, axis=-1, keepdims=True)
    var = jnp.mean((x - mu) ** 2, axis=-1, keepdims=True)
    return (x - mu) * lax.rsqrt(var + eps) * g + b


def _mha_ref(q_in, kv_in, w_in, b_in, w_out, b_out, nhead):
    E = q_in.shape[-1]
    hd = E // nhead
    scale = 1.0 / float(hd) ** 0.5
    q = _linear(q_in, w_in[:E], b_in[:E])
    k = _linear(kv_in, w_in[E:2 * E], b_in[E:2 * E])
    v = _linear(kv_in, w_in[2 * E:], b_in[2 * E:])
    outs = []
    for h in range(nhead):
        sl = slice(h * hd, (h + 1) * hd)
        s = lax.dot_general(q[:, sl] * scale, k[:, sl],
                            (((1,), (1,)), ((), ())),
                            preferred_element_type=jnp.float32)
        s = s - jnp.max(s, axis=-1, keepdims=True)
        p = jnp.exp(s)
        p = p / jnp.sum(p, axis=-1, keepdims=True)
        outs.append(jnp.dot(p, v[:, sl], preferred_element_type=jnp.float32))
    return _linear(jnp.concatenate(outs, axis=-1), w_out, b_out)


def reference_forward(x, encoder_out, params, nhead):
    def per_batch(xb, eb):
        h = _mha_ref(xb, xb, params["sa_in_w"], params["sa_in_b"],
                     params["sa_out_w"], params["sa_out_b"], nhead)
        y = _layer_norm_ref(xb + h, params["ln1_g"], params["ln1_b"])
        h = _mha_ref(y, eb, params["ca_in_w"], params["ca_in_b"],
                     params["ca_out_w"], params["ca_out_b"], nhead)
        y = _layer_norm_ref(y + h, params["ln2_g"], params["ln2_b"])
        f = _linear(jnp.maximum(
            _linear(y, params["ffn_w1"], params["ffn_b1"]), 0.0),
            params["ffn_w2"], params["ffn_b2"])
        return _layer_norm_ref(y + f, params["ln3_g"], params["ln3_b"])

    return jax.vmap(per_batch, in_axes=(1, 1), out_axes=1)(x, encoder_out)


# ------------------------------------ main -----------------------------------

if __name__ == "__main__":
    d_model, nhead, dim_ff = 32, 4, 64
    L, S, N = 8, 12, 2  # tgt seq, encoder seq, batch

    key = jax.random.PRNGKey(0)
    ks = jax.random.split(key, 24)
    init = lambda k, shape, s=0.05: (s * jax.random.normal(k, shape)).astype(jnp.float32)

    params = {
        "sa_in_w":  init(ks[0], (3 * d_model, d_model)),
        "sa_in_b":  init(ks[1], (3 * d_model,)),
        "sa_out_w": init(ks[2], (d_model, d_model)),
        "sa_out_b": init(ks[3], (d_model,)),
        "ca_in_w":  init(ks[4], (3 * d_model, d_model)),
        "ca_in_b":  init(ks[5], (3 * d_model,)),
        "ca_out_w": init(ks[6], (d_model, d_model)),
        "ca_out_b": init(ks[7], (d_model,)),
        "ffn_w1":   init(ks[8], (dim_ff, d_model)),
        "ffn_b1":   init(ks[9], (dim_ff,)),
        "ffn_w2":   init(ks[10], (d_model, dim_ff)),
        "ffn_b2":   init(ks[11], (d_model,)),
        "ln1_g": (1.0 + init(ks[12], (d_model,))).astype(jnp.float32),
        "ln1_b": init(ks[13], (d_model,)),
        "ln2_g": (1.0 + init(ks[14], (d_model,))).astype(jnp.float32),
        "ln2_b": init(ks[15], (d_model,)),
        "ln3_g": (1.0 + init(ks[16], (d_model,))).astype(jnp.float32),
        "ln3_b": init(ks[17], (d_model,)),
    }

    x = jax.random.normal(ks[18], (L, N, d_model), dtype=jnp.float32)
    encoder_out = jax.random.normal(ks[19], (S, N, d_model), dtype=jnp.float32)

    out = transformer_decoder_layer(x, encoder_out, params, nhead)
    out = jax.block_until_ready(out)

    ref = reference_forward(x, encoder_out, params, nhead)
    assert out.shape == (L, N, d_model), out.shape
    assert bool(jnp.all(jnp.isfinite(out)))
    assert bool(jnp.allclose(out, ref, atol=2e-3, rtol=2e-3)), (
        float(jnp.max(jnp.abs(out - ref))))

    print("KERNEL_OK")
</pallas_src>

<mosaic_0001>
module attributes {stable_mosaic.version = 11 : i64} {
  func.func @_decoder_layer_kernel(%arg0: memref<16x32xf32, #tpu.memory_space<vmem>>, %arg1: memref<24x32xf32, #tpu.memory_space<vmem>>, %arg2: memref<32x96xf32, #tpu.memory_space<vmem>>, %arg3: memref<1x96xf32, #tpu.memory_space<vmem>>, %arg4: memref<32x32xf32, #tpu.memory_space<vmem>>, %arg5: memref<32x32xf32, #tpu.memory_space<vmem>>, %arg6: memref<32x64xf32, #tpu.memory_space<vmem>>, %arg7: memref<1x64xf32, #tpu.memory_space<vmem>>, %arg8: memref<32x32xf32, #tpu.memory_space<vmem>>, %arg9: memref<32x64xf32, #tpu.memory_space<vmem>>, %arg10: memref<1x64xf32, #tpu.memory_space<vmem>>, %arg11: memref<64x32xf32, #tpu.memory_space<vmem>>, %arg12: memref<10x32xf32, #tpu.memory_space<vmem>>, %arg13: memref<16x32xf32, #tpu.memory_space<vmem>>) attributes {dimension_semantics = [], scalar_prefetch = 0 : i64, scratch_operands = 0 : i64, tpu.core_type = #tpu.core_type<tc>} {
    %c0 = arith.constant 0 : index
    %c0_0 = arith.constant 0 : index
    %0 = vector.load %arg0[%c0, %c0_0] : memref<16x32xf32, #tpu.memory_space<vmem>>, vector<16x32xf32>
    %c0_1 = arith.constant 0 : index
    %c0_2 = arith.constant 0 : index
    %1 = vector.load %arg1[%c0_1, %c0_2] : memref<24x32xf32, #tpu.memory_space<vmem>>, vector<24x32xf32>
    %c0_3 = arith.constant 0 : index
    %c0_4 = arith.constant 0 : index
    %2 = vector.load %arg12[%c0_3, %c0_4] : memref<10x32xf32, #tpu.memory_space<vmem>>, vector<10x32xf32>
    %c0_5 = arith.constant 0 : index
    %c0_6 = arith.constant 0 : index
    %3 = vector.load %arg2[%c0_5, %c0_6] : memref<32x96xf32, #tpu.memory_space<vmem>>, vector<32x96xf32>
    %cst = arith.constant dense<0.000000e+00> : vector<16x96xf32>
    %4 = tpu.matmul %0, %3, %cst {dimension_numbers = #tpu.dot_dimension_numbers<[1], [0], [0], [1], [0, 0, 1, 1], [], []>} : vector<16x32xf32>, vector<32x96xf32>, vector<16x96xf32> -> vector<16x96xf32>
    %c0_7 = arith.constant 0 : index
    %c0_8 = arith.constant 0 : index
    %5 = vector.load %arg3[%c0_7, %c0_8] : memref<1x96xf32, #tpu.memory_space<vmem>>, vector<1x96xf32>
    %6 = vector.broadcast %5 : vector<1x96xf32> to vector<16x96xf32>
    %7 = arith.addf %4, %6 : vector<16x96xf32>
    %8 = vector.extract_strided_slice %7 {offsets = [0, 0], sizes = [16, 32], strides = [1, 1]} : vector<16x96xf32> to vector<16x32xf32>
    %9 = vector.shape_cast %8 : vector<16x32xf32> to vector<2x8x32xf32>
    %10 = vector.extract_strided_slice %9 {offsets = [0, 0, 0], sizes = [2, 8, 8], strides = [1, 1, 1]} : vector<2x8x32xf32> to vector<2x8x8xf32>
    %11 = vector.extract_strided_slice %9 {offsets = [0, 0, 8], sizes = [2, 8, 8], strides = [1, 1, 1]} : vector<2x8x32xf32> to vector<2x8x8xf32>
    %12 = vector.extract_strided_slice %9 {offsets = [0, 0, 16], sizes = [2, 8, 8], strides = [1, 1, 1]} : vector<2x8x32xf32> to vector<2x8x8xf32>
    %13 = vector.extract_strided_slice %9 {offsets = [0, 0, 24], sizes = [2, 8, 8], strides = [1, 1, 1]} : vector<2x8x32xf32> to vector<2x8x8xf32>
    %14 = tpu.concatenate %10, %11, %12, %13 in 0 : vector<2x8x8xf32>, vector<2x8x8xf32>, vector<2x8x8xf32>, vector<2x8x8xf32> -> vector<8x8x8xf32>
    %15 = vector.extract_strided_slice %7 {offsets = [0, 32], sizes = [16, 32], strides = [1, 1]} : vector<16x96xf32> to vector<16x32xf32>
    %16 = vector.shape_cast %15 : vector<16x32xf32> to vector<2x8x32xf32>
    %17 = vector.extract_strided_slice %16 {offsets = [0, 0, 0], sizes = [2, 8, 8], strides = [1, 1, 1]} : vector<2x8x32xf32> to vector<2x8x8xf32>
    %18 = vector.extract_strided_slice %16 {offsets = [0, 0, 8], sizes = [2, 8, 8], strides = [1, 1, 1]} : vector<2x8x32xf32> to vector<2x8x8xf32>
    %19 = vector.extract_strided_slice %16 {offsets = [0, 0, 16], sizes = [2, 8, 8], strides = [1, 1, 1]} : vector<2x8x32xf32> to vector<2x8x8xf32>
    %20 = vector.extract_strided_slice %16 {offsets = [0, 0, 24], sizes = [2, 8, 8], strides = [1, 1, 1]} : vector<2x8x32xf32> to vector<2x8x8xf32>
    %21 = tpu.concatenate %17, %18, %19, %20 in 0 : vector<2x8x8xf32>, vector<2x8x8xf32>, vector<2x8x8xf32>, vector<2x8x8xf32> -> vector<8x8x8xf32>
    %22 = vector.extract_strided_slice %7 {offsets = [0, 64], sizes = [16, 32], strides = [1, 1]} : vector<16x96xf32> to vector<16x32xf32>
    %23 = vector.shape_cast %22 : vector<16x32xf32> to vector<2x8x32xf32>
    %24 = vector.extract_strided_slice %23 {offsets = [0, 0, 0], sizes = [2, 8, 8], strides = [1, 1, 1]} : vector<2x8x32xf32> to vector<2x8x8xf32>
    %25 = vector.extract_strided_slice %23 {offsets = [0, 0, 8], sizes = [2, 8, 8], strides = [1, 1, 1]} : vector<2x8x32xf32> to vector<2x8x8xf32>
    %26 = vector.extract_strided_slice %23 {offsets = [0, 0, 16], sizes = [2, 8, 8], strides = [1, 1, 1]} : vector<2x8x32xf32> to vector<2x8x8xf32>
    %27 = vector.extract_strided_slice %23 {offsets = [0, 0, 24], sizes = [2, 8, 8], strides = [1, 1, 1]} : vector<2x8x32xf32> to vector<2x8x8xf32>
    %28 = tpu.concatenate %24, %25, %26, %27 in 0 : vector<2x8x8xf32>, vector<2x8x8xf32>, vector<2x8x8xf32>, vector<2x8x8xf32> -> vector<8x8x8xf32>
    "tpu.trace_start"() <{level = 10 : i32, message = "bld,bsd->bls"}> : () -> ()
    %cst_9 = arith.constant dense<0.000000e+00> : vector<8x8x8xf32>
    %29 = tpu.matmul %14, %21, %cst_9 {dimension_numbers = #tpu.dot_dimension_numbers<[2], [2], [1], [1], [0, 0, 0, 1, 1, 1], [0], [0]>} : vector<8x8x8xf32>, vector<8x8x8xf32>, vector<8x8x8xf32> -> vector<8x8x8xf32>
    "tpu.trace_stop"() : () -> ()
    %cst_10 = arith.constant dense<0xFF800000> : vector<8x8xf32>
    %30 = vector.multi_reduction <maximumf>, %29, %cst_10 [2] : vector<8x8x8xf32> to vector<8x8xf32>
    %31 = vector.shape_cast %30 : vector<8x8xf32> to vector<8x8x1xf32>
    %32 = vector.broadcast %31 : vector<8x8x1xf32> to vector<8x8x8xf32>
    %33 = arith.subf %29, %32 : vector<8x8x8xf32>
    %34 = math.exp %33 : vector<8x8x8xf32>
    %cst_11 = arith.constant dense<0.000000e+00> : vector<8x8xf32>
    %35 = vector.multi_reduction <add>, %34, %cst_11 [2] : vector<8x8x8xf32> to vector<8x8xf32>
    %36 = vector.shape_cast %35 : vector<8x8xf32> to vector<8x8x1xf32>
    %37 = tpu.reciprocal %36 {approx = true} : vector<8x8x1xf32> -> vector<8x8x1xf32>
    %38 = vector.broadcast %37 : vector<8x8x1xf32> to vector<8x8x8xf32>
    %39 = arith.mulf %34, %38 : vector<8x8x8xf32>
    "tpu.trace_start"() <{level = 10 : i32, message = "bls,bsd->bld"}> : () -> ()
    %cst_12 = arith.constant dense<0.000000e+00> : vector<8x8x8xf32>
    %40 = tpu.matmul %39, %28, %cst_12 {dimension_numbers = #tpu.dot_dimension_numbers<[2], [1], [1], [2], [0, 0, 0, 1, 1, 2], [0], [0]>} : vector<8x8x8xf32>, vector<8x8x8xf32>, vector<8x8x8xf32> -> vector<8x8x8xf32>
    "tpu.trace_stop"() : () -> ()
    %41 = vector.extract_strided_slice %40 {offsets = [0, 0, 0], sizes = [2, 8, 8], strides = [1, 1, 1]} : vector<8x8x8xf32> to vector<2x8x8xf32>
    %42 = vector.extract_strided_slice %40 {offsets = [2, 0, 0], sizes = [2, 8, 8], strides = [1, 1, 1]} : vector<8x8x8xf32> to vector<2x8x8xf32>
    %43 = vector.extract_strided_slice %40 {offsets = [4, 0, 0], sizes = [2, 8, 8], strides = [1, 1, 1]} : vector<8x8x8xf32> to vector<2x8x8xf32>
    %44 = vector.extract_strided_slice %40 {offsets = [6, 0, 0], sizes = [2, 8, 8], strides = [1, 1, 1]} : vector<8x8x8xf32> to vector<2x8x8xf32>
    %45 = tpu.concatenate %41, %42, %43, %44 in 2 : vector<2x8x8xf32>, vector<2x8x8xf32>, vector<2x8x8xf32>, vector<2x8x8xf32> -> vector<2x8x32xf32>
    %46 = vector.shape_cast %45 : vector<2x8x32xf32> to vector<16x32xf32>
    %c0_13 = arith.constant 0 : index
    %c0_14 = arith.constant 0 : index
    %47 = vector.load %arg4[%c0_13, %c0_14] : memref<32x32xf32, #tpu.memory_space<vmem>>, vector<32x32xf32>
    %cst_15 = arith.constant dense<0.000000e+00> : vector<16x32xf32>
    %48 = tpu.matmul %46, %47, %cst_15 {dimension_numbers = #tpu.dot_dimension_numbers<[1], [0], [0], [1], [0, 0, 1, 1], [], []>} : vector<16x32xf32>, vector<32x32xf32>, vector<16x32xf32> -> vector<16x32xf32>
    %49 = vector.extract_strided_slice %2 {offsets = [0, 0], sizes = [1, 32], strides = [1, 1]} : vector<10x32xf32> to vector<1x32xf32>
    %50 = vector.broadcast %49 : vector<1x32xf32> to vector<16x32xf32>
    %51 = arith.addf %48, %50 : vector<16x32xf32>
    %52 = arith.addf %0, %51 : vector<16x32xf32>
    %cst_16 = arith.constant dense<0.000000e+00> : vector<16xf32>
    %53 = vector.multi_reduction <add>, %52, %cst_16 [1] : vector<16x32xf32> to vector<16xf32>
    %54 = vector.shape_cast %53 : vector<16xf32> to vector<16x1xf32>
    %cst_17 = arith.constant 3.200000e+01 : f32
    %55 = vector.broadcast %cst_17 : f32 to vector<16x1xf32>
    %56 = arith.divf %54, %55 : vector<16x1xf32>
    %57 = vector.broadcast %56 : vector<16x1xf32> to vector<16x32xf32>
    %58 = arith.subf %52, %57 : vector<16x32xf32>
    %59 = arith.mulf %58, %58 : vector<16x32xf32>
    %cst_18 = arith.constant dense<0.000000e+00> : vector<16xf32>
    %60 = vector.multi_reduction <add>, %59, %cst_18 [1] : vector<16x32xf32> to vector<16xf32>
    %61 = vector.shape_cast %60 : vector<16xf32> to vector<16x1xf32>
    %cst_19 = arith.constant 3.200000e+01 : f32
    %62 = vector.broadcast %cst_19 : f32 to vector<16x1xf32>
    %63 = arith.divf %61, %62 : vector<16x1xf32>
    %64 = vector.broadcast %56 : vector<16x1xf32> to vector<16x32xf32>
    %65 = arith.subf %52, %64 : vector<16x32xf32>
    %cst_20 = arith.constant 9.99999974E-6 : f32
    %66 = vector.broadcast %cst_20 : f32 to vector<16x1xf32>
    %67 = arith.addf %63, %66 : vector<16x1xf32>
    %68 = math.rsqrt %67 : vector<16x1xf32>
    %69 = vector.broadcast %68 : vector<16x1xf32> to vector<16x32xf32>
    %70 = arith.mulf %65, %69 : vector<16x32xf32>
    %71 = vector.extract_strided_slice %2 {offsets = [4, 0], sizes = [1, 32], strides = [1, 1]} : vector<10x32xf32> to vector<1x32xf32>
    %72 = vector.broadcast %71 : vector<1x32xf32> to vector<16x32xf32>
    %73 = arith.mulf %70, %72 : vector<16x32xf32>
    %74 = vector.extract_strided_slice %2 {offsets = [5, 0], sizes = [1, 32], strides = [1, 1]} : vector<10x32xf32> to vector<1x32xf32>
    %75 = vector.broadcast %74 : vector<1x32xf32> to vector<16x32xf32>
    %76 = arith.addf %73, %75 : vector<16x32xf32>
    %c0_21 = arith.constant 0 : index
    %c0_22 = arith.constant 0 : index
    %77 = vector.load %arg5[%c0_21, %c0_22] : memref<32x32xf32, #tpu.memory_space<vmem>>, vector<32x32xf32>
    %cst_23 = arith.constant dense<0.000000e+00> : vector<16x32xf32>
    %78 = tpu.matmul %76, %77, %cst_23 {dimension_numbers = #tpu.dot_dimension_numbers<[1], [0], [0], [1], [0, 0, 1, 1], [], []>} : vector<16x32xf32>, vector<32x32xf32>, vector<16x32xf32> -> vector<16x32xf32>
    %79 = vector.extract_strided_slice %2 {offsets = [1, 0], sizes = [1, 32], strides = [1, 1]} : vector<10x32xf32> to vector<1x32xf32>
    %80 = vector.broadcast %79 : vector<1x32xf32> to vector<16x32xf32>
    %81 = arith.addf %78, %80 : vector<16x32xf32>
    %c0_24 = arith.constant 0 : index
    %c0_25 = arith.constant 0 : index
    %82 = vector.load %arg6[%c0_24, %c0_25] : memref<32x64xf32, #tpu.memory_space<vmem>>, vector<32x64xf32>
    %cst_26 = arith.constant dense<0.000000e+00> : vector<24x64xf32>
    %83 = tpu.matmul %1, %82, %cst_26 {dimension_numbers = #tpu.dot_dimension_numbers<[1], [0], [0], [1], [0, 0, 1, 1], [], []>} : vector<24x32xf32>, vector<32x64xf32>, vector<24x64xf32> -> vector<24x64xf32>
    %c0_27 = arith.constant 0 : index
    %c0_28 = arith.constant 0 : index
    %84 = vector.load %arg7[%c0_27, %c0_28] : memref<1x64xf32, #tpu.memory_space<vmem>>, vector<1x64xf32>
    %85 = vector.broadcast %84 : vector<1x64xf32> to vector<24x64xf32>
    %86 = arith.addf %83, %85 : vector<24x64xf32>
    %87 = vector.shape_cast %81 : vector<16x32xf32> to vector<2x8x32xf32>
    %88 = vector.extract_strided_slice %87 {offsets = [0, 0, 0], sizes = [2, 8, 8], strides = [1, 1, 1]} : vector<2x8x32xf32> to vector<2x8x8xf32>
    %89 = vector.extract_strided_slice %87 {offsets = [0, 0, 8], sizes = [2, 8, 8], strides = [1, 1, 1]} : vector<2x8x32xf32> to vector<2x8x8xf32>
    %90 = vector.extract_strided_slice %87 {offsets = [0, 0, 16], sizes = [2, 8, 8], strides = [1, 1, 1]} : vector<2x8x32xf32> to vector<2x8x8xf32>
    %91 = vector.extract_strided_slice %87 {offsets = [0, 0, 24], sizes = [2, 8, 8], strides = [1, 1, 1]} : vector<2x8x32xf32> to vector<2x8x8xf32>
    %92 = tpu.concatenate %88, %89, %90, %91 in 0 : vector<2x8x8xf32>, vector<2x8x8xf32>, vector<2x8x8xf32>, vector<2x8x8xf32> -> vector<8x8x8xf32>
    %93 = vector.extract_strided_slice %86 {offsets = [0, 0], sizes = [24, 32], strides = [1, 1]} : vector<24x64xf32> to vector<24x32xf32>
    %94 = vector.shape_cast %93 : vector<24x32xf32> to vector<2x12x32xf32>
    %95 = vector.extract_strided_slice %94 {offsets = [0, 0, 0], sizes = [2, 12, 8], strides = [1, 1, 1]} : vector<2x12x32xf32> to vector<2x12x8xf32>
    %96 = vector.extract_strided_slice %94 {offsets = [0, 0, 8], sizes = [2, 12, 8], strides = [1, 1, 1]} : vector<2x12x32xf32> to vector<2x12x8xf32>
    %97 = vector.extract_strided_slice %94 {offsets = [0, 0, 16], sizes = [2, 12, 8], strides = [1, 1, 1]} : vector<2x12x32xf32> to vector<2x12x8xf32>
    %98 = vector.extract_strided_slice %94 {offsets = [0, 0, 24], sizes = [2, 12, 8], strides = [1, 1, 1]} : vector<2x12x32xf32> to vector<2x12x8xf32>
    %99 = tpu.concatenate %95, %96, %97, %98 in 0 : vector<2x12x8xf32>, vector<2x12x8xf32>, vector<2x12x8xf32>, vector<2x12x8xf32> -> vector<8x12x8xf32>
    %100 = vector.extract_strided_slice %86 {offsets = [0, 32], sizes = [24, 32], strides = [1, 1]} : vector<24x64xf32> to vector<24x32xf32>
    %101 = vector.shape_cast %100 : vector<24x32xf32> to vector<2x12x32xf32>
    %102 = vector.extract_strided_slice %101 {offsets = [0, 0, 0], sizes = [2, 12, 8], strides = [1, 1, 1]} : vector<2x12x32xf32> to vector<2x12x8xf32>
    %103 = vector.extract_strided_slice %101 {offsets = [0, 0, 8], sizes = [2, 12, 8], strides = [1, 1, 1]} : vector<2x12x32xf32> to vector<2x12x8xf32>
    %104 = vector.extract_strided_slice %101 {offsets = [0, 0, 16], sizes = [2, 12, 8], strides = [1, 1, 1]} : vector<2x12x32xf32> to vector<2x12x8xf32>
    %105 = vector.extract_strided_slice %101 {offsets = [0, 0, 24], sizes = [2, 12, 8], strides = [1, 1, 1]} : vector<2x12x32xf32> to vector<2x12x8xf32>
    %106 = tpu.concatenate %102, %103, %104, %105 in 0 : vector<2x12x8xf32>, vector<2x12x8xf32>, vector<2x12x8xf32>, vector<2x12x8xf32> -> vector<8x12x8xf32>
    "tpu.trace_start"() <{level = 10 : i32, message = "bld,bsd->bls"}> : () -> ()
    %cst_29 = arith.constant dense<0.000000e+00> : vector<8x8x12xf32>
    %107 = tpu.matmul %92, %99, %cst_29 {dimension_numbers = #tpu.dot_dimension_numbers<[2], [2], [1], [1], [0, 0, 0, 1, 1, 1], [0], [0]>} : vector<8x8x8xf32>, vector<8x12x8xf32>, vector<8x8x12xf32> -> vector<8x8x12xf32>
    "tpu.trace_stop"() : () -> ()
    %cst_30 = arith.constant dense<0xFF800000> : vector<8x8xf32>
    %108 = vector.multi_reduction <maximumf>, %107, %cst_30 [2] : vector<8x8x12xf32> to vector<8x8xf32>
    %109 = vector.shape_cast %108 : vector<8x8xf32> to vector<8x8x1xf32>
    %110 = vector.broadcast %109 : vector<8x8x1xf32> to vector<8x8x12xf32>
    %111 = arith.subf %107, %110 : vector<8x8x12xf32>
    %112 = math.exp %111 : vector<8x8x12xf32>
    %cst_31 = arith.constant dense<0.000000e+00> : vector<8x8xf32>
    %113 = vector.multi_reduction <add>, %112, %cst_31 [2] : vector<8x8x12xf32> to vector<8x8xf32>
    %114 = vector.shape_cast %113 : vector<8x8xf32> to vector<8x8x1xf32>
    %115 = tpu.reciprocal %114 {approx = true} : vector<8x8x1xf32> -> vector<8x8x1xf32>
    %116 = vector.broadcast %115 : vector<8x8x1xf32> to vector<8x8x12xf32>
    %117 = arith.mulf %112, %116 : vector<8x8x12xf32>
    "tpu.trace_start"() <{level = 10 : i32, message = "bls,bsd->bld"}> : () -> ()
    %cst_32 = arith.constant dense<0.000000e+00> : vector<8x8x8xf32>
    %118 = tpu.matmul %117, %106, %cst_32 {dimension_numbers = #tpu.dot_dimension_numbers<[2], [1], [1], [2], [0, 0, 0, 1, 1, 2], [0], [0]>} : vector<8x8x12xf32>, vector<8x12x8xf32>, vector<8x8x8xf32> -> vector<8x8x8xf32>
    "tpu.trace_stop"() : () -> ()
    %119 = vector.extract_strided_slice %118 {offsets = [0, 0, 0], sizes = [2, 8, 8], strides = [1, 1, 1]} : vector<8x8x8xf32> to vector<2x8x8xf32>
    %120 = vector.extract_strided_slice %118 {offsets = [2, 0, 0], sizes = [2, 8, 8], strides = [1, 1, 1]} : vector<8x8x8xf32> to vector<2x8x8xf32>
    %121 = vector.extract_strided_slice %118 {offsets = [4, 0, 0], sizes = [2, 8, 8], strides = [1, 1, 1]} : vector<8x8x8xf32> to vector<2x8x8xf32>
    %122 = vector.extract_strided_slice %118 {offsets = [6, 0, 0], sizes = [2, 8, 8], strides = [1, 1, 1]} : vector<8x8x8xf32> to vector<2x8x8xf32>
    %123 = tpu.concatenate %119, %120, %121, %122 in 2 : vector<2x8x8xf32>, vector<2x8x8xf32>, vector<2x8x8xf32>, vector<2x8x8xf32> -> vector<2x8x32xf32>
    %124 = vector.shape_cast %123 : vector<2x8x32xf32> to vector<16x32xf32>
    %c0_33 = arith.constant 0 : index
    %c0_34 = arith.constant 0 : index
    %125 = vector.load %arg8[%c0_33, %c0_34] : memref<32x32xf32, #tpu.memory_space<vmem>>, vector<32x32xf32>
    %cst_35 = arith.constant dense<0.000000e+00> : vector<16x32xf32>
    %126 = tpu.matmul %124, %125, %cst_35 {dimension_numbers = #tpu.dot_dimension_numbers<[1], [0], [0], [1], [0, 0, 1, 1], [], []>} : vector<16x32xf32>, vector<32x32xf32>, vector<16x32xf32> -> vector<16x32xf32>
    %127 = vector.extract_strided_slice %2 {offsets = [2, 0], sizes = [1, 32], strides = [1, 1]} : vector<10x32xf32> to vector<1x32xf32>
    %128 = vector.broadcast %127 : vector<1x32xf32> to vector<16x32xf32>
    %129 = arith.addf %126, %128 : vector<16x32xf32>
    %130 = arith.addf %76, %129 : vector<16x32xf32>
    %cst_36 = arith.constant dense<0.000000e+00> : vector<16xf32>
    %131 = vector.multi_reduction <add>, %130, %cst_36 [1] : vector<16x32xf32> to vector<16xf32>
    %132 = vector.shape_cast %131 : vector<16xf32> to vector<16x1xf32>
    %cst_37 = arith.constant 3.200000e+01 : f32
    %133 = vector.broadcast %cst_37 : f32 to vector<16x1xf32>
    %134 = arith.divf %132, %133 : vector<16x1xf32>
    %135 = vector.broadcast %134 : vector<16x1xf32> to vector<16x32xf32>
    %136 = arith.subf %130, %135 : vector<16x32xf32>
    %137 = arith.mulf %136, %136 : vector<16x32xf32>
    %cst_38 = arith.constant dense<0.000000e+00> : vector<16xf32>
    %138 = vector.multi_reduction <add>, %137, %cst_38 [1] : vector<16x32xf32> to vector<16xf32>
    %139 = vector.shape_cast %138 : vector<16xf32> to vector<16x1xf32>
    %cst_39 = arith.constant 3.200000e+01 : f32
    %140 = vector.broadcast %cst_39 : f32 to vector<16x1xf32>
    %141 = arith.divf %139, %140 : vector<16x1xf32>
    %142 = vector.broadcast %134 : vector<16x1xf32> to vector<16x32xf32>
    %143 = arith.subf %130, %142 : vector<16x32xf32>
    %cst_40 = arith.constant 9.99999974E-6 : f32
    %144 = vector.broadcast %cst_40 : f32 to vector<16x1xf32>
    %145 = arith.addf %141, %144 : vector<16x1xf32>
    %146 = math.rsqrt %145 : vector<16x1xf32>
    %147 = vector.broadcast %146 : vector<16x1xf32> to vector<16x32xf32>
    %148 = arith.mulf %143, %147 : vector<16x32xf32>
    %149 = vector.extract_strided_slice %2 {offsets = [6, 0], sizes = [1, 32], strides = [1, 1]} : vector<10x32xf32> to vector<1x32xf32>
    %150 = vector.broadcast %149 : vector<1x32xf32> to vector<16x32xf32>
    %151 = arith.mulf %148, %150 : vector<16x32xf32>
    %152 = vector.extract_strided_slice %2 {offsets = [7, 0], sizes = [1, 32], strides = [1, 1]} : vector<10x32xf32> to vector<1x32xf32>
    %153 = vector.broadcast %152 : vector<1x32xf32> to vector<16x32xf32>
    %154 = arith.addf %151, %153 : vector<16x32xf32>
    %c0_41 = arith.constant 0 : index
    %c0_42 = arith.constant 0 : index
    %155 = vector.load %arg9[%c0_41, %c0_42] : memref<32x64xf32, #tpu.memory_space<vmem>>, vector<32x64xf32>
    %cst_43 = arith.constant dense<0.000000e+00> : vector<16x64xf32>
    %156 = tpu.matmul %154, %155, %cst_43 {dimension_numbers = #tpu.dot_dimension_numbers<[1], [0], [0], [1], [0, 0, 1, 1], [], []>} : vector<16x32xf32>, vector<32x64xf32>, vector<16x64xf32> -> vector<16x64xf32>
    %c0_44 = arith.constant 0 : index
    %c0_45 = arith.constant 0 : index
    %157 = vector.load %arg10[%c0_44, %c0_45] : memref<1x64xf32, #tpu.memory_space<vmem>>, vector<1x64xf32>
    %158 = vector.broadcast %157 : vector<1x64xf32> to vector<16x64xf32>
    %159 = arith.addf %156, %158 : vector<16x64xf32>
    %cst_46 = arith.constant 0.000000e+00 : f32
    %160 = vector.broadcast %cst_46 : f32 to vector<16x64xf32>
    %161 = arith.maximumf %159, %160 : vector<16x64xf32>
    %c0_47 = arith.constant 0 : index
    %c0_48 = arith.constant 0 : index
    %162 = vector.load %arg11[%c0_47, %c0_48] : memref<64x32xf32, #tpu.memory_space<vmem>>, vector<64x32xf32>
    %cst_49 = arith.constant dense<0.000000e+00> : vector<16x32xf32>
    %163 = tpu.matmul %161, %162, %cst_49 {dimension_numbers = #tpu.dot_dimension_numbers<[1], [0], [0], [1], [0, 0, 1, 1], [], []>} : vector<16x64xf32>, vector<64x32xf32>, vector<16x32xf32> -> vector<16x32xf32>
    %164 = vector.extract_strided_slice %2 {offsets = [3, 0], sizes = [1, 32], strides = [1, 1]} : vector<10x32xf32> to vector<1x32xf32>
    %165 = vector.broadcast %164 : vector<1x32xf32> to vector<16x32xf32>
    %166 = arith.addf %163, %165 : vector<16x32xf32>
    %167 = arith.addf %154, %166 : vector<16x32xf32>
    %cst_50 = arith.constant dense<0.000000e+00> : vector<16xf32>
    %168 = vector.multi_reduction <add>, %167, %cst_50 [1] : vector<16x32xf32> to vector<16xf32>
    %169 = vector.shape_cast %168 : vector<16xf32> to vector<16x1xf32>
    %cst_51 = arith.constant 3.200000e+01 : f32
    %170 = vector.broadcast %cst_51 : f32 to vector<16x1xf32>
    %171 = arith.divf %169, %170 : vector<16x1xf32>
    %172 = vector.broadcast %171 : vector<16x1xf32> to vector<16x32xf32>
    %173 = arith.subf %167, %172 : vector<16x32xf32>
    %174 = arith.mulf %173, %173 : vector<16x32xf32>
    %cst_52 = arith.constant dense<0.000000e+00> : vector<16xf32>
    %175 = vector.multi_reduction <add>, %174, %cst_52 [1] : vector<16x32xf32> to vector<16xf32>
    %176 = vector.shape_cast %175 : vector<16xf32> to vector<16x1xf32>
    %cst_53 = arith.constant 3.200000e+01 : f32
    %177 = vector.broadcast %cst_53 : f32 to vector<16x1xf32>
    %178 = arith.divf %176, %177 : vector<16x1xf32>
    %179 = vector.broadcast %171 : vector<16x1xf32> to vector<16x32xf32>
    %180 = arith.subf %167, %179 : vector<16x32xf32>
    %cst_54 = arith.constant 9.99999974E-6 : f32
    %181 = vector.broadcast %cst_54 : f32 to vector<16x1xf32>
    %182 = arith.addf %178, %181 : vector<16x1xf32>
    %183 = math.rsqrt %182 : vector<16x1xf32>
    %184 = vector.broadcast %183 : vector<16x1xf32> to vector<16x32xf32>
    %185 = arith.mulf %180, %184 : vector<16x32xf32>
    %186 = vector.extract_strided_slice %2 {offsets = [8, 0], sizes = [1, 32], strides = [1, 1]} : vector<10x32xf32> to vector<1x32xf32>
    %187 = vector.broadcast %186 : vector<1x32xf32> to vector<16x32xf32>
    %188 = arith.mulf %185, %187 : vector<16x32xf32>
    %189 = vector.extract_strided_slice %2 {offsets = [9, 0], sizes = [1, 32], strides = [1, 1]} : vector<10x32xf32> to vector<1x32xf32>
    %190 = vector.broadcast %189 : vector<1x32xf32> to vector<16x32xf32>
    %191 = arith.addf %188, %190 : vector<16x32xf32>
    %c0_55 = arith.constant 0 : index
    %c0_56 = arith.constant 0 : index
    %192 = vector.load %arg13[%c0_55, %c0_56] : memref<16x32xf32, #tpu.memory_space<vmem>>, vector<16x32xf32>
    tpu.vector_store %arg13[%c0_55, %c0_56], %191 {strides = array<i32>} : memref<16x32xf32, #tpu.memory_space<vmem>>, vector<16x32xf32>,
    return
  }
}

</mosaic_0001>

<bundles_post_ra>
// kernel: tpu_custom_call.1
= control target key start
LH: loop header
LB: loop body
LE: loop exit
PB: predicated region body
PF: predicated region fallthrough
CT: control target
= control target key end

     0   :  { %18 = vsyncpa [#allocation3], 0  ;;  %s5437_s0 = inlined_call_operand.hbm [shape: f32[16,32], index: 0, kind: input, shape index: {}]   ;;  %s5438_s1 = inlined_call_operand.hbm [shape: f32[24,32], index: 1, kind: input, shape index: {}]   ;;  %s5439_s2 = inlined_call_operand.vmem [shape: f32[32,96], index: 2, kind: input, shape index: {}]   ;;  %s5440_s3 = inlined_call_operand.vmem [shape: f32[1,96], index: 3, kind: input, shape index: {}]   ;;  %s5441_s4 = inlined_call_operand.vmem [shape: f32[32,32], index: 4, kind: input, shape index: {}]   ;;  %s5442_s5 = inlined_call_operand.vmem [shape: f32[32,32], index: 5, kind: input, shape index: {}]   ;;  %s5443_s6 = inlined_call_operand.hbm [shape: f32[32,64], index: 6, kind: input, shape index: {}]   ;;  %s5444_s7 = inlined_call_operand.vmem [shape: f32[1,64], index: 7, kind: input, shape index: {}]   ;;  %s5445_s8 = inlined_call_operand.hbm [shape: f32[32,32], index: 8, kind: input, shape index: {}]   ;;  %s5446_s9 = inlined_call_operand.hbm [shape: f32[32,64], index: 9, kind: input, shape index: {}]   ;;  %s5447_s10 = inlined_call_operand.vmem [shape: f32[1,64], index: 10, kind: input, shape index: {}]   ;;  %s5448_s11 = inlined_call_operand.vmem [shape: f32[64,32], index: 11, kind: input, shape index: {}]   ;;  %s5449_s12 = inlined_call_operand.hbm [shape: f32[10,32], index: 12, kind: input, shape index: {}]   ;;  %s5450_s13 = inlined_call_operand.hbm [shape: f32[16,32], index: 13, kind: output, shape index: {}]  }
   0x1   :  { %19 = vsyncpa [#allocation6], 0 }
   0x2   :  { %20 = vsyncpa [#allocation9], 0 }
   0x3   :  { %21 = vsyncpa [#allocation12], 0 }
   0x4   :  { %22 = vsyncpa [#allocation4], 0  ;;  %s4642_s25 = smov [#allocation5]   ;;  %s4643_s27 = smov [#allocation8]  }
   0x5   :  { %s40_s26 = sshll.u32 %s4642_s25, 4  ;;  %s74_s28 = sshll.u32 %s4643_s27, 4  ;;  %s41_s26 = int_to_ptr.vmem [resolvable:$true] %s40_s26  ;;  %s4732_s28 = int_to_ptr.vmem [resolvable:$true] %s74_s28 }
   0x6   :  { %s4478_s14 = scalar_lea.hbm %s5438_s1, 384 }
   0x7   :  { %p4479_p0 = scmp.ne.s32.totalorder %s5438_s1, %s4478_s14  ;;  %p4482_p1 = scmp.lt.u32.totalorder %s4478_s14, %s5438_s1 }
   0x9   :  { %p4484_p2 = pnand %p4482_p1, %p4479_p0 }
   0xb   :  { %4487 = shalt.err (!%p4484_p2)
}
   0xc   :  { %s4488_s19 = scalar_lea.vmem %s41_s26, 384  ;;  %p4493_p4 = scmp.lt.s32.totalorder %s41_s26, %s41_s26 }
   0xd   :  { %p4489_p3 = scmp.ne.s32.totalorder %s41_s26, %s4488_s19  ;;  %p4494_p5 = scmp.lt.s32.totalorder %s4488_s19, %s4488_s19 }
   0xf   :  { %p4495_p6 = por %p4494_p5, %p4493_p4 }
  0x11   :  { %p4496_p7 = pnand %p4495_p6, %p4489_p3 }
  0x13   :  { %4499 = shalt.err (!%p4496_p7)
}
  0x14   :  { %s4644_s20 = smov 128   ;;  %s4645_s21 = smov 8  }
  0x15   :  { %46 = dma.hbm_to_vmem [thread:$0]  %s5438_s1, 384, %s41_s26, [#allocation6], %s4644_s20, %s4644_s20, %s4645_s21  }
  0x16   :  { %s4500_s27 = scalar_lea.hbm %s5445_s8, 512 }
  0x17   :  { %p4501_p8 = scmp.ne.s32.totalorder %s5445_s8, %s4500_s27  ;;  %p4504_p9 = scmp.lt.u32.totalorder %s4500_s27, %s5445_s8 }
  0x19   :  { %p4506_p10 = pnand %p4504_p9, %p4501_p8 }
  0x1b   :  { %4509 = shalt.err (!%p4506_p10)
}
  0x1c   :  { %s4510_s16 = scalar_lea.vmem %s4732_s28, 512  ;;  %p4515_p12 = scmp.lt.s32.totalorder %s4732_s28, %s4732_s28 }
  0x1d   :  { %p4511_p11 = scmp.ne.s32.totalorder %s4732_s28, %s4510_s16  ;;  %p4516_p13 = scmp.lt.s32.totalorder %s4510_s16, %s4510_s16 }
  0x1f   :  { %p4517_p0 = por %p4516_p13, %p4515_p12 }
  0x21   :  { %p4518_p1 = pnand %p4517_p0, %p4511_p11 }
  0x23   :  { %4521 = shalt.err (!%p4518_p1)
}
  0x24   :  { %80 = dma.hbm_to_vmem [thread:$0]  %s5445_s8, 512, %s4732_s28, [#allocation9], %s4644_s20, %s4644_s20, %s4645_s21  }
  0x25   :  { %s4646_s17 = smov [#allocation2]   ;;  %s4647_s19 = smov [#allocation7]  }
  0x26   :  { %s28_s18 = sshll.u32 %s4646_s17, 4  ;;  %s60_s22 = sshll.u32 %s4647_s19, 4  ;;  %s29_s18 = int_to_ptr.vmem [resolvable:$true] %s28_s18  ;;  %s4769_s22 = int_to_ptr.vmem [resolvable:$true] %s60_s22 }
  0x27   :  { %s4522_s25 = scalar_lea.hbm %s5437_s0, 256 }
  0x28   :  { %p4523_p2 = scmp.ne.s32.totalorder %s5437_s0, %s4522_s25  ;;  %p4526_p3 = scmp.lt.u32.totalorder %s4522_s25, %s5437_s0 }
  0x2a   :  { %p4528_p4 = pnand %p4526_p3, %p4523_p2 }
  0x2c   :  { %4531 = shalt.err (!%p4528_p4)
}
  0x2d   :  { %s4532_s8 = scalar_lea.vmem %s29_s18, 256  ;;  %p4537_p6 = scmp.lt.s32.totalorder %s29_s18, %s29_s18 }
  0x2e   :  { %p4533_p5 = scmp.ne.s32.totalorder %s29_s18, %s4532_s8  ;;  %p4538_p7 = scmp.lt.s32.totalorder %s4532_s8, %s4532_s8 }
  0x30   :  { %p4539_p8 = por %p4538_p7, %p4537_p6 }
  0x32   :  { %p4540_p9 = pnand %p4539_p8, %p4533_p5 }
  0x34   :  { %4543 = shalt.err (!%p4540_p9)
}
  0x35   :  { %34 = dma.hbm_to_vmem [thread:$0]  %s5437_s0, 256, %s29_s18, [#allocation3], %s4644_s20, %s4644_s20, %s4645_s21  }
  0x36   :  { %s4544_s26 = scalar_lea.hbm %s5443_s6, 512 }
  0x37   :  { %p4545_p10 = scmp.ne.s32.totalorder %s5443_s6, %s4544_s26  ;;  %p4548_p11 = scmp.lt.u32.totalorder %s4544_s26, %s5443_s6 }
  0x39   :  { %p4550_p12 = pnand %p4548_p11, %p4545_p10 }
  0x3b   :  { %4553 = shalt.err (!%p4550_p12)
}
  0x3c   :  { %s4554_s25 = scalar_lea.vmem %s4769_s22, 512  ;;  %p4559_p0 = scmp.lt.s32.totalorder %s4769_s22, %s4769_s22 }
  0x3d   :  { %p4555_p13 = scmp.ne.s32.totalorder %s4769_s22, %s4554_s25  ;;  %p4560_p1 = scmp.lt.s32.totalorder %s4554_s25, %s4554_s25 }
  0x3f   :  { %p4561_p2 = por %p4560_p1, %p4559_p0 }
  0x41   :  { %p4562_p3 = pnand %p4561_p2, %p4555_p13 }
  0x43   :  { %4565 = shalt.err (!%p4562_p3)
}
  0x44   :  { %66 = dma.hbm_to_vmem [thread:$0]  %s5443_s6, 512, %s4769_s22, [#allocation6], %s4644_s20, %s4644_s20, %s4645_s21  }
  0x45   :  { %s4648_s27 = smov [#allocation10]   ;;  %s4649_s30 = smov [#allocation11]  }
  0x46   :  { %s86_s29 = sshll.u32 %s4648_s27, 4  ;;  %s102_s14 = sshll.u32 %s4649_s30, 4  ;;  %s87_s29 = int_to_ptr.vmem [resolvable:$true] %s86_s29  ;;  %s4806_s14 = int_to_ptr.vmem [resolvable:$true] %s102_s14 }
  0x47   :  { %s4566_s15 = scalar_lea.hbm %s5446_s9, 512 }
  0x48   :  { %p4567_p4 = scmp.ne.s32.totalorder %s5446_s9, %s4566_s15  ;;  %p4570_p5 = scmp.lt.u32.totalorder %s4566_s15, %s5446_s9 }
  0x4a   :  { %p4572_p6 = pnand %p4570_p5, %p4567_p4 }
  0x4c   :  { %4575 = shalt.err (!%p4572_p6)
}
  0x4d   :  { %s4576_s6 = scalar_lea.vmem %s87_s29, 512  ;;  %p4581_p8 = scmp.lt.s32.totalorder %s87_s29, %s87_s29 }
  0x4e   :  { %p4577_p7 = scmp.ne.s32.totalorder %s87_s29, %s4576_s6  ;;  %p4582_p9 = scmp.lt.s32.totalorder %s4576_s6, %s4576_s6 }
  0x50   :  { %p4583_p10 = por %p4582_p9, %p4581_p8 }
  0x52   :  { %p4584_p11 = pnand %p4583_p10, %p4577_p7 }
  0x54   :  { %4587 = shalt.err (!%p4584_p11)
}
  0x55   :  { %92 = dma.hbm_to_vmem [thread:$0]  %s5446_s9, 512, %s87_s29, [#allocation9], %s4644_s20, %s4644_s20, %s4645_s21  }
  0x56   :  { %s4588_s25 = scalar_lea.hbm %s5449_s12, 256 }
  0x57   :  { %p4589_p12 = scmp.ne.s32.totalorder %s5449_s12, %s4588_s25  ;;  %p4592_p13 = scmp.lt.u32.totalorder %s4588_s25, %s5449_s12 }
  0x59   :  { %p4594_p0 = pnand %p4592_p13, %p4589_p12 }
  0x5b   :  { %4597 = shalt.err (!%p4594_p0)
}
  0x5c   :  { %s4598_s8 = scalar_lea.vmem %s4806_s14, 256  ;;  %p4603_p2 = scmp.lt.s32.totalorder %s4806_s14, %s4806_s14 }
  0x5d   :  { %p4599_p1 = scmp.ne.s32.totalorder %s4806_s14, %s4598_s8  ;;  %p4604_p3 = scmp.lt.s32.totalorder %s4598_s8, %s4598_s8 }
  0x5f   :  { %p4605_p4 = por %p4604_p3, %p4603_p2 }
  0x61   :  { %p4606_p5 = pnand %p4605_p4, %p4599_p1 }
  0x63   :  { %4609 = shalt.err (!%p4606_p5)
}
  0x64   :  { %108 = dma.hbm_to_vmem [thread:$0]  %s5449_s12, 256, %s4806_s14, [#allocation12], %s4644_s20, %s4644_s20, %s4645_s21  }
  0x65   :  { %4632 = dma.done.wait [#allocation3], 256  }
  0x66   :  { %4633 = vsyncadd [#allocation3], 4294967040 }
  0x67   :  { %4634 = dma.done.wait [#allocation6], 896  }
  0x68   :  { %4635 = vsyncadd [#allocation6], 4294966400 }
  0x69   :  { %4636 = dma.done.wait [#allocation9], 1024  }
  0x6a   :  { %4637 = vsyncadd [#allocation9], 4294966272 }
  0x6b   :  { %4638 = dma.done.wait [#allocation12], 256  }
  0x6c   :  { %4639 = vsyncadd [#allocation12], 4294967040  ;;  %vm145_vm0 = vcmask 261120   ;;  %v134_v0 = vld [vmem:[%s5439_s2] sm:$0xff]  ;;  %v135_v1 = vld [vmem:[%s5439_s2 + $0x8] sm:$0xff]  ;;  %v4650_v10 = vmov 0.0  }
  0x6d   :  { %v136_v2 = vld [vmem:[%s5439_s2 + $0x10] sm:$0xff]  ;;  %v4200_v3 = vpack.c.bf16 %v135_v1, %v134_v0  ;;  %v137_v4 = vld [vmem:[%s5439_s2 + $0x18] sm:$0xff]  ;;  %v4855_v5 = vld [vmem:[#allocation2] sm:$0xff]  ;;  %3933 = vmatprep.subr.mxu1 %v4650_v10  ;;  %s4651_s2 = smov 112   ;;  %s4652_s19 = smov 120   ;;  %vm4653_vm1 = vmmov 0  }
  0x6e   :  { %v4204_v6 = vpack.c.bf16 %v137_v4, %v136_v2  ;;  %3925 = vmatprep.mubr.msk.f32.mxu0 %vm145_vm0, %v4855_v5  ;;  %v4859_v7 = vld [vmem:[#allocation2 + $0x8] sm:$0xff]  ;;  %v3708_v8 = vld [vmem:[%s5440_s3] ss:$0 sm:$0xff]  ;;  %3935 = vmatprep.mubr.msk.f32.mxu1 %vm4653_vm1, %v4650_v10  ;;  %s4654_s3 = smov 104   ;;  %s4655_s23 = smov 96   ;;  %vm243_vm2 = vcmask 64512  }
  0x6f   :  { %4201 = vmatprep.subr.bf16.mxu0 %v4200_v3  ;;  %s4656_s24 = smov 64   ;;  %s4657_s28 = smov 16   ;;  %vm1572_vm3 = vcmask 130048   ;;  %vm1575_vm4 = vcmask 195584   ;;  %vm5154_vm5 = vmpackc.low %vm243_vm2, %vm243_vm2  ;;  %vm2569_vm6 = vcmask 97280   ;;  %vm2666_vm7 = vcmask 1043456  }
  0x70   :  { %4203 = vmatpush3.bf16.msra.mxu0 %v4200_v3  ;;  %s4658_s15 = smov 24   ;;  %vm4660_vm8 = vmmov 1   ;;  %vm3564_vm10 = vcmask 523264  }
  0x71   :  { %4205 = vmatprep.subr.bf16.mxu0 %v4204_v6  ;;  %vm5286_vm9 = vmpackc.low %vm2666_vm7, %vm4660_vm8 }
  0x74   :  { %4207 = vmatpush3.bf16.msra.mxu0 %v4204_v6 }
  0x75   :  { %3928 = vmatprep.subr.mxu0 %v4650_v10 }
  0x77   :  { %3926 = vmatmul.mubr.msk.f32.vlgmr.msra.gmra.mrb[0].mxu0 %vm145_vm0, %v4859_v7 }
  0x78   :  { %3930 = vmatprep.mubr.msk.f32.mxu0 %vm4653_vm1, %v4650_v10 }
 0x14a   :  { %v3927_v9 = vpop.f32.mrb[0].mxu0 }
 0x14b   :  { %v218_v11 = vpop.f32.mrb[1].mxu0  ;;  %v4878_v13 = vadd.f32 %v3927_v9, %v3708_v8 }
 0x14c   :  { %v4868_v12 = vadd.f32 %v3708_v8, %v218_v11 }
 0x14e   :  { %233 = vrot.lane.b32.xlu1 %v4868_v12, %s4651_s2  ;;  %229 = vrot.lane.b32.xlu0 %v4868_v12, %s4652_s19 }
 0x152   :  { %235 = vrot.lane.b32.xlu1 %v4878_v13, %s4651_s2  ;;  %231 = vrot.lane.b32.xlu0 %v4878_v13, %s4652_s19 }
 0x156   :  { %239 = vrot.lane.b32.xlu1 %v4878_v13, %s4654_s3  ;;  %237 = vrot.lane.b32.xlu0 %v4868_v12, %s4654_s3 }
 0x15a   :  { %318 = vrot.lane.b32.xlu1 %v4878_v13, %s4655_s23  ;;  %241 = vrot.lane.b32.xlu0 %v4868_v12, %s4655_s23 }
 0x1c0   :  { %v4892_v14 = vpop.permute.xlu1 %233  ;;  %v4894_v15 = vpop.permute.xlu0 %229 }
 0x1c1   :  { %394 = vrot.lane.b32.xlu0 %v4894_v15, %s4655_s23 }
 0x1c4   :  { %v4898_v16 = vpop.permute.xlu1 %235  ;;  %v4900_v17 = vpop.permute.xlu0 %231 }
 0x1c5   :  { %546 = vrot.lane.b32.xlu0 %v4892_v14, %s4655_s23  ;;  %470 = vrot.lane.b32.xlu1 %v4900_v17, %s4655_s23 }
 0x1c8   :  { %v4906_v18 = vpop.permute.xlu1 %239  ;;  %v4908_v19 = vpop.permute.xlu0 %237 }
 0x1c9   :  { %622 = vrot.lane.b32.xlu1 %v4898_v16, %s4655_s23  ;;  %698 = vrot.lane.b32.xlu0 %v4908_v19, %s4655_s23 }
 0x1cc   :  { %v319_v20 = vpop.permute.xlu1 %318  ;;  %v242_v21 = vpop.permute.xlu0 %241 }
 0x1cd   :  { %3934 = vmatpush3.xpose.msk.msra.mxu1 %vm243_vm2, %v319_v20  ;;  %774 = vrot.lane.b32.xlu1 %v4906_v18, %s4655_s23 }
 0x1ce   :  { %3929 = vmatpush3.xpose.msk.msra.mxu0 %vm243_vm2, %v242_v21  ;;  %3943 = vmatprep.subr.mxu1 %v4650_v10 }
 0x1cf   :  { %3938 = vmatprep.subr.mxu0 %v4650_v10 }
 0x1d0   :  { %3936 = vmatmul.mubr.msk.f32.vlgmr.msra.gmra.mrb[0].mxu1 %vm243_vm2, %v4878_v13 }
 0x1d1   :  { %3931 = vmatmul.mubr.msk.f32.vlgmr.msra.gmra.mrb[2].mxu0 %vm243_vm2, %v4868_v12  ;;  %3945 = vmatprep.mubr.msk.f32.mxu1 %vm4653_vm1, %v4650_v10 }
 0x1d2   :  { %3940 = vmatprep.mubr.msk.f32.mxu0 %vm4653_vm1, %v4650_v10 }
 0x233   :  { %v395_v22 = vpop.permute.xlu0 %394 }
 0x234   :  { %3939 = vmatpush3.xpose.msk.msra.mxu0 %vm243_vm2, %v395_v22 }
 0x235   :  { %3948 = vmatprep.subr.mxu0 %v4650_v10 }
 0x237   :  { %v471_v23 = vpop.permute.xlu1 %470  ;;  %3941 = vmatmul.mubr.msk.f32.vlgmr.msra.gmra.mrb[4].mxu0 %vm243_vm2, %v4894_v15  ;;  %v547_v24 = vpop.permute.xlu0 %546 }
 0x238   :  { %3944 = vmatpush3.xpose.msk.msra.mxu1 %vm243_vm2, %v471_v23  ;;  %3949 = vmatpush3.xpose.msk.msra.mxu0 %vm243_vm2, %v547_v24 }
 0x239   :  { %3950 = vmatprep.mubr.msk.f32.mxu0 %vm4653_vm1, %v4650_v10  ;;  %3953 = vmatprep.subr.mxu1 %v4650_v10 }
 0x23a   :  { %3958 = vmatprep.subr.mxu0 %v4650_v10 }
 0x23b   :  { %3946 = vmatmul.mubr.msk.f32.vlgmr.msra.gmra.mrb[2].mxu1 %vm243_vm2, %v4900_v17  ;;  %v623_v25 = vpop.permute.xlu1 %622  ;;  %3951 = vmatmul.mubr.msk.f32.vlgmr.msra.gmra.mrb[6].mxu0 %vm243_vm2, %v4892_v14  ;;  %v699_v26 = vpop.permute.xlu0 %698 }
 0x23c   :  { %3954 = vmatpush3.xpose.msk.msra.mxu1 %vm243_vm2, %v623_v25  ;;  %3959 = vmatpush3.xpose.msk.msra.mxu0 %vm243_vm2, %v699_v26 }
 0x23d   :  { %3955 = vmatprep.mubr.msk.f32.mxu1 %vm4653_vm1, %v4650_v10  ;;  %3960 = vmatprep.mubr.msk.f32.mxu0 %vm4653_vm1, %v4650_v10 }
 0x23e   :  { %3963 = vmatprep.subr.mxu1 %v4650_v10  ;;  %3968 = vmatprep.subr.mxu0 %v4650_v10 }
 0x23f   :  { %3956 = vmatmul.mubr.msk.f32.vlgmr.msra.gmra.mrb[4].mxu1 %vm243_vm2, %v4898_v16  ;;  %v775_v27 = vpop.permute.xlu1 %774  ;;  %3961 = vmatmul.mubr.msk.f32.vlgmr.msra.gmra.mrb[8].mxu0 %vm243_vm2, %v4908_v19 }
 0x240   :  { %3964 = vmatpush3.xpose.msk.msra.mxu1 %vm243_vm2, %v775_v27  ;;  %3965 = vmatprep.mubr.msk.f32.mxu1 %vm4653_vm1, %v4650_v10 }
 0x241   :  { %3973 = vmatprep.subr.mxu1 %v4650_v10  ;;  %3970 = vmatprep.mubr.msk.f32.mxu0 %vm4653_vm1, %v4650_v10 }
 0x243   :  { %3966 = vmatmul.mubr.msk.f32.vlgmr.msra.gmra.mrb[6].mxu1 %vm243_vm2, %v4906_v18 }
 0x244   :  { %3975 = vmatprep.mubr.msk.f32.mxu1 %vm4653_vm1, %v4650_v10 }
 0x2a3   :  { %v390_v28 = vpop.f32.mrb[0].mxu1 }
 0x2a4   :  { %v314_v29 = vpop.f32.mrb[2].mxu0  ;;  %v3937_v30 = vpop.f32.mrb[1].mxu1  ;;  %v853_v31 = vsel %vm243_vm2, %v390_v28, -inf }
 0x2a5   :  { %v3932_v32 = vpop.f32.mrb[3].mxu0  ;;  %854 = vmax.xlane.f32.xlu1 %v853_v31  ;;  %v850_v33 = vsel %vm243_vm2, %v314_v29, -inf }
 0x2a6   :  { %851 = vmax.xlane.f32.xlu0 %v850_v33 }
 0x30a   :  { %v466_v34 = vpop.f32.mrb[4].mxu0 }
 0x30b   :  { %v3942_v35 = vpop.f32.mrb[5].mxu0  ;;  %v856_v36 = vsel %vm243_vm2, %v466_v34, -inf }
 0x30c   :  { %857 = vmax.xlane.f32.xlu0 %v856_v36 }
 0x30e   :  { %v542_v37 = vpop.f32.mrb[2].mxu1  ;;  %v618_v38 = vpop.f32.mrb[6].mxu0 }
 0x30f   :  { %v3947_v39 = vpop.f32.mrb[3].mxu1  ;;  %v3952_v40 = vpop.f32.mrb[7].mxu0  ;;  %v859_v41 = vsel %vm243_vm2, %v542_v37, -inf  ;;  %v862_v42 = vsel %vm243_vm2, %v618_v38, -inf }
 0x310   :  { %860 = vmax.xlane.f32.xlu0 %v859_v41  ;;  %863 = vmax.xlane.f32.xlu1 %v862_v42 }
 0x312   :  { %v694_v43 = vpop.f32.mrb[4].mxu1  ;;  %v770_v44 = vpop.f32.mrb[8].mxu0 }
 0x313   :  { %v3957_v45 = vpop.f32.mrb[5].mxu1  ;;  %v3962_v46 = vpop.f32.mrb[9].mxu0  ;;  %v865_v47 = vsel %vm243_vm2, %v694_v43, -inf  ;;  %v868_v48 = vsel %vm243_vm2, %v770_v44, -inf }
 0x314   :  { %866 = vmax.xlane.f32.xlu0 %v865_v47  ;;  %869 = vmax.xlane.f32.xlu1 %v868_v48 }
 0x316   :  { %v846_v49 = vpop.f32.mrb[6].mxu1 }
 0x317   :  { %v3967_v50 = vpop.f32.mrb[7].mxu1  ;;  %v871_v51 = vsel %vm243_vm2, %v846_v49, -inf }
 0x318   :  { %872 = vmax.xlane.f32.xlu0 %v871_v51 }
 0x325   :  { %938 = vrot.lane.b32.xlu1 %v4868_v12, %s4656_s24 }
 0x329   :  { %1090 = vrot.lane.b32.xlu1 %v4894_v15, %s4656_s24 }
 0x32d   :  { %1166 = vrot.lane.b32.xlu1 %v4900_v17, %s4656_s24 }
 0x32e   :  { %1014 = vrot.lane.b32.xlu0 %v4878_v13, %s4656_s24 }
 0x331   :  { %1318 = vrot.lane.b32.xlu1 %v4898_v16, %s4656_s24 }
 0x332   :  { %1242 = vrot.lane.b32.xlu0 %v4892_v14, %s4656_s24  ;;  %v855_v52 = vpop.xlane.xlu1 %854 }
 0x333   :  { %v875_v53 = vsub.f32 %v390_v28, %v855_v52  ;;  %v852_v54 = vpop.xlane.xlu0 %851 }
 0x334   :  { %v874_v56 = vsub.f32 %v314_v29, %v852_v54 }
 0x335   :  { %v884_v55 = vmul.f32 1.442695, %v875_v53 }
 0x336   :  { %v882_v57 = vmul.f32 1.442695, %v874_v56 }
 0x337   :  { %4401 = vpow2.f32 %v884_v55 }
 0x338   :  { %4403 = vpow2.f32 %v882_v57 }
 0x341   :  { %v4984_v58 = vpop.eup %4401 }
 0x342   :  { %v901_v59 = vsel %vm243_vm2, %v4984_v58, 0.0  ;;  %v4988_v60 = vpop.eup %4403 }
 0x343   :  { %v898_v61 = vsel %vm243_vm2, %v4988_v60, 0.0 }
 0x351   :  { %902 = vadd.xlane.f32.xlu0 %v901_v59 }
 0x355   :  { %899 = vadd.xlane.f32.xlu1 %v898_v61 }
 0x399   :  { %v858_v62 = vpop.xlane.xlu0 %857 }
 0x39a   :  { %v876_v63 = vsub.f32 %v466_v34, %v858_v62 }
 0x39c   :  { %v886_v0 = vmul.f32 1.442695, %v876_v63 }
 0x39d   :  { %v864_v1 = vpop.xlane.xlu1 %863  ;;  %v861_v2 = vpop.xlane.xlu0 %860 }
 0x39e   :  { %4405 = vpow2.f32 %v886_v0  ;;  %v878_v3 = vsub.f32 %v618_v38, %v864_v1  ;;  %v877_v4 = vsub.f32 %v542_v37, %v861_v2 }
 0x3a0   :  { %v890_v6 = vmul.f32 1.442695, %v878_v3  ;;  %v888_v8 = vmul.f32 1.442695, %v877_v4  ;;  %v1578_v3 = vld [vmem:[%s5441_s4] sm:$0xff]  ;;  %v1579_v4 = vld [vmem:[%s5441_s4 + $0x8] sm:$0xff] }
 0x3a1   :  { %v870_v9 = vpop.xlane.xlu1 %869  ;;  %v867_v11 = vpop.xlane.xlu0 %866 }
 0x3a2   :  { %4407 = vpow2.f32 %v890_v6  ;;  %v880_v12 = vsub.f32 %v770_v44, %v870_v9  ;;  %v879_v13 = vsub.f32 %v694_v43, %v867_v11  ;;  %v4208_v6 = vpack.c.bf16 %v1579_v4, %v1578_v3  ;;  %v1581_v9 = vld [vmem:[%s5441_s4 + $0x18] sm:$0xff]  ;;  %v1708_v3 = vld [vmem:[%s5442_s5] sm:$0xff]  ;;  %v1709_v4 = vld [vmem:[%s5442_s5 + $0x8] sm:$0xff] }
 0x3a3   :  { %4409 = vpow2.f32 %v888_v8  ;;  %v1580_v8 = vld [vmem:[%s5441_s4 + $0x10] sm:$0xff] }
 0x3a4   :  { %v894_v14 = vmul.f32 1.442695, %v880_v12  ;;  %v892_v15 = vmul.f32 1.442695, %v879_v13  ;;  %v4212_v11 = vpack.c.bf16 %v1581_v9, %v1580_v8  ;;  %v1710_v8 = vld [vmem:[%s5442_s5 + $0x10] sm:$0xff]  ;;  %v1711_v9 = vld [vmem:[%s5442_s5 + $0x18] sm:$0xff] }
 0x3a5   :  { %v939_v16 = vpop.permute.xlu1 %938  ;;  %v873_v17 = vpop.xlane.xlu0 %872 }
 0x3a6   :  { %4411 = vpow2.f32 %v894_v14  ;;  %v881_v20 = vsub.f32 %v846_v49, %v873_v17  ;;  %3969 = vmatpush3.msra.mxu0 %v939_v16 }
 0x3a7   :  { %4413 = vpow2.f32 %v892_v15  ;;  %3978 = vmatprep.subr.mxu0 %v4650_v10 }
 0x3a8   :  { %v4406_v21 = vpop.eup %4405  ;;  %v896_v22 = vmul.f32 1.442695, %v881_v20 }
 0x3a9   :  { %v1015_v23 = vpop.permute.xlu0 %1014  ;;  %v904_v24 = vsel %vm243_vm2, %v4406_v21, 0.0  ;;  %v1091_v35 = vpop.permute.xlu1 %1090 }
 0x3aa   :  { %4415 = vpow2.f32 %v896_v22  ;;  %905 = vadd.xlane.f32.xlu1 %v904_v24  ;;  %3974 = vmatpush3.msra.mxu1 %v1015_v23 }
 0x3ab   :  { %3983 = vmatprep.subr.mxu1 %v4650_v10 }
 0x3ac   :  { %v4408_v25 = vpop.eup %4407 }
 0x3ad   :  { %v4410_v26 = vpop.eup %4409  ;;  %v910_v27 = vsel %vm243_vm2, %v4408_v25, 0.0  ;;  %v1167_v36 = vpop.permute.xlu1 %1166 }
 0x3ae   :  { %911 = vadd.xlane.f32.xlu1 %v910_v27  ;;  %v907_v28 = vsel %vm243_vm2, %v4410_v26, 0.0  ;;  %v1243_v37 = vpop.permute.xlu0 %1242 }
 0x3af   :  { %908 = vadd.xlane.f32.xlu0 %v907_v28 }
 0x3b0   :  { %v4412_v29 = vpop.eup %4411 }
 0x3b1   :  { %v4414_v30 = vpop.eup %4413  ;;  %v916_v31 = vsel %vm243_vm2, %v4412_v29, 0.0  ;;  %v1319_v38 = vpop.permute.xlu1 %1318 }
 0x3b2   :  { %917 = vadd.xlane.f32.xlu1 %v916_v31  ;;  %v913_v32 = vsel %vm243_vm2, %v4414_v30, 0.0 }
 0x3b3   :  { %914 = vadd.xlane.f32.xlu0 %v913_v32 }
 0x3b4   :  { %v4999_v33 = vpop.eup %4415 }
 0x3b5   :  { %v919_v34 = vsel %vm243_vm2, %v4999_v33, 0.0 }
 0x3b7   :  { %920 = vadd.xlane.f32.xlu0 %v919_v34 }
 0x3c3   :  { %1470 = vrot.lane.b32.xlu1 %v4906_v18, %s4656_s24 }
 0x3cd   :  { %1394 = vrot.lane.b32.xlu0 %v4908_v19, %s4656_s24 }
 0x3de   :  { %v903_v39 = vpop.xlane.xlu0 %902 }
 0x3df   :  { %4417 = vrcp.f32 %v903_v39 }
 0x3e2   :  { %v900_v40 = vpop.xlane.xlu1 %899 }
 0x3e3   :  { %4419 = vrcp.f32 %v900_v40 }
 0x3e9   :  { %v4418_v41 = vpop.eup %4417 }
 0x3ea   :  { %v931_v42 = vmul.f32 %v4418_v41, %v4984_v58  ;;  %v5065_v41 = vld [vmem:[#allocation11] sm:$0xff] }
 0x3ec   :  { %3976 = vmatmul.mubr.msk.f32.vlgmr.msra.gmra.mrb[8].mxu1 %vm243_vm2, %v931_v42 }
 0x3ed   :  { %v4420_v43 = vpop.eup %4419  ;;  %3984 = vmatpush3.msra.mxu1 %v1167_v36  ;;  %3985 = vmatprep.mubr.msk.f32.mxu1 %vm4653_vm1, %v4650_v10 }
 0x3ee   :  { %v930_v18 = vmul.f32 %v4420_v43, %v4988_v60  ;;  %3993 = vmatprep.subr.mxu1 %v4650_v10 }
 0x3f0   :  { %3971 = vmatmul.mubr.msk.f32.vlgmr.msra.gmra.mrb[10].mxu0 %vm243_vm2, %v930_v18 }
 0x3f1   :  { %3979 = vmatpush3.msra.mxu0 %v1091_v35  ;;  %3980 = vmatprep.mubr.msk.f32.mxu0 %vm4653_vm1, %v4650_v10 }
 0x3f2   :  { %3988 = vmatprep.subr.mxu0 %v4650_v10 }
 0x437   :  { %v906_v19 = vpop.xlane.xlu1 %905 }
 0x438   :  { %4421 = vrcp.f32 %v906_v19 }
 0x43b   :  { %v912_v44 = vpop.xlane.xlu1 %911 }
 0x43c   :  { %4423 = vrcp.f32 %v912_v44  ;;  %v909_v45 = vpop.xlane.xlu0 %908 }
 0x43d   :  { %4425 = vrcp.f32 %v909_v45 }
 0x43f   :  { %v918_v46 = vpop.xlane.xlu1 %917 }
 0x440   :  { %4427 = vrcp.f32 %v918_v46  ;;  %v915_v47 = vpop.xlane.xlu0 %914 }
 0x441   :  { %4429 = vrcp.f32 %v915_v47 }
 0x442   :  { %v4422_v48 = vpop.eup %4421 }
 0x443   :  { %v932_v49 = vmul.f32 %v4422_v48, %v4406_v21  ;;  %v1471_v60 = vpop.permute.xlu1 %1470 }
 0x444   :  { %v921_v50 = vpop.xlane.xlu0 %920 }
 0x445   :  { %4431 = vrcp.f32 %v921_v50  ;;  %3981 = vmatmul.mubr.msk.f32.vlgmr.msra.gmra.mrb[12].mxu0 %vm243_vm2, %v932_v49  ;;  %v1797_v49 = vld [vmem:[#allocation7] sm:$0xff]  ;;  %v1798_v50 = vld [vmem:[#allocation7 + $0x8] sm:$0xff] }
 0x446   :  { %v4424_v51 = vpop.eup %4423  ;;  %3989 = vmatpush3.msra.mxu0 %v1243_v37  ;;  %3990 = vmatprep.mubr.msk.f32.mxu0 %vm4653_vm1, %v4650_v10 }
 0x447   :  { %v4426_v52 = vpop.eup %4425  ;;  %v934_v53 = vmul.f32 %v4424_v51, %v4408_v25  ;;  %3998 = vmatprep.subr.mxu0 %v4650_v10  ;;  %v1799_v51 = vld [vmem:[#allocation7 + $0x10] sm:$0xff] }
 0x448   :  { %v933_v54 = vmul.f32 %v4426_v52, %v4410_v26  ;;  %v1395_v55 = vpop.permute.xlu0 %1394  ;;  %v4659_v52 = vmov 0.0|0.0  }
 0x449   :  { %3991 = vmatmul.mubr.msk.f32.vlgmr.msra.gmra.mrb[14].mxu0 %vm243_vm2, %v934_v53  ;;  %v4225_v53 = vpack.c.bf16 %v1798_v50, %v1797_v49 }
 0x44a   :  { %v4428_v56 = vpop.eup %4427  ;;  %3986 = vmatmul.mubr.msk.f32.vlgmr.msra.gmra.mrb[10].mxu1 %vm243_vm2, %v933_v54  ;;  %3999 = vmatpush3.msra.mxu0 %v1395_v55  ;;  %v1800_v54 = vld [vmem:[#allocation7 + $0x18] sm:$0xff] }
 0x44b   :  { %v4430_v57 = vpop.eup %4429  ;;  %v936_v58 = vmul.f32 %v4428_v56, %v4412_v29  ;;  %3994 = vmatpush3.msra.mxu1 %v1319_v38  ;;  %3995 = vmatprep.mubr.msk.f32.mxu1 %vm4653_vm1, %v4650_v10  ;;  %v1582_v38 = vlaneseq  ;;  %v4228_v55 = vpack.c.bf16 %v1800_v54, %v1799_v51  ;;  %v131_v56 = vld [vmem:[#allocation5 + $0x10] sm:$0xff] }
 0x44c   :  { %v935_v59 = vmul.f32 %v4430_v57, %v4414_v30  ;;  %4000 = vmatprep.mubr.msk.f32.mxu0 %vm4653_vm1, %v4650_v10  ;;  %4003 = vmatprep.subr.mxu1 %v4650_v10 }
 0x44d   :  { %4001 = vmatmul.mubr.msk.f32.vlgmr.msra.gmra.mrb[16].mxu0 %vm243_vm2, %v936_v58  ;;  %4209 = vmatprep.subr.bf16.mxu0 %v4208_v6  ;;  %v5062_v39 = vshrl.u32 %v1582_v38, 7 }
 0x44e   :  { %3996 = vmatmul.mubr.msk.f32.vlgmr.msra.gmra.mrb[12].mxu1 %vm243_vm2, %v935_v59  ;;  %4211 = vmatpush3.bf16.msra.mxu0 %v4208_v6  ;;  %v4216_v6 = vpack.c.bf16 %v1709_v4, %v1708_v3 }
 0x44f   :  { %v4432_v61 = vpop.eup %4431  ;;  %4004 = vmatpush3.msra.mxu1 %v1471_v60  ;;  %4005 = vmatprep.mubr.msk.f32.mxu1 %vm4653_vm1, %v4650_v10  ;;  %v1584_v40 = vsub.s32 0, %v5062_v39 }
 0x450   :  { %v937_v62 = vmul.f32 %v4432_v61, %v4999_v33  ;;  %4213 = vmatprep.subr.bf16.mxu0 %v4212_v11  ;;  %4217 = vmatprep.subr.bf16.mxu1 %v4216_v6 }
 0x451   :  { %v1585_v42 = vrot.slane %v5065_v41, %v1584_v40 }
 0x452   :  { %4006 = vmatmul.mubr.msk.f32.vlgmr.msra.gmra.mrb[14].mxu1 %vm243_vm2, %v937_v62  ;;  %4215 = vmatpush3.bf16.msra.mxu0 %v4212_v11  ;;  %v4220_v11 = vpack.c.bf16 %v1711_v9, %v1710_v8 }
 0x453   :  { %4224 = vmatprep.subr.bf16.mxu0 %v4659_v52  ;;  %4219 = vmatpush3.bf16.msra.mxu1 %v4216_v6 }
 0x454   :  { %4221 = vmatprep.subr.bf16.mxu1 %v4220_v11 }
 0x457   :  { %4223 = vmatpush3.bf16.msra.mxu1 %v4220_v11  ;;  %v1714_v11 = vsub.s32 1, %v5062_v39 }
 0x458   :  { %4230 = vmatprep.subr.bf16.mxu1 %v4659_v52 }
 0x4bf   :  { %v1086_v63 = vpop.f32.mrb[8].mxu1 }
 0x4c0   :  { %v3977_v0 = vpop.f32.mrb[9].mxu1 }
 0x4c3   :  { %v1010_v1 = vpop.f32.mrb[10].mxu0 }
 0x4c4   :  { %v3972_v2 = vpop.f32.mrb[11].mxu0 }
 0x518   :  { %v1162_v12 = vpop.f32.mrb[12].mxu0 }
 0x519   :  { %v3982_v13 = vpop.f32.mrb[13].mxu0  ;;  %1548 = vrot.lane.b32.xlu0 %v1162_v12, %s4645_s21  ;;  %v3739_v12 = vld [vmem:[%s5444_s7] ss:$0 sm:$0xff] }
 0x51c   :  { %v1314_v14 = vpop.f32.mrb[14].mxu0 }
 0x51d   :  { %v1238_v15 = vpop.f32.mrb[10].mxu1  ;;  %1556 = vrot.lane.b32.xlu0 %v1314_v14, %s4657_s28  ;;  %v3992_v16 = vpop.f32.mrb[15].mxu0 }
 0x51e   :  { %1550 = vrot.lane.b32.xlu1 %v1238_v15, %s4645_s21  ;;  %v3987_v17 = vpop.f32.mrb[11].mxu1 }
 0x520   :  { %v1466_v20 = vpop.f32.mrb[16].mxu0 }
 0x521   :  { %v1390_v21 = vpop.f32.mrb[12].mxu1  ;;  %1564 = vrot.lane.b32.xlu0 %v1466_v20, %s4658_s15  ;;  %v4002_v22 = vpop.f32.mrb[17].mxu0 }
 0x522   :  { %1558 = vrot.lane.b32.xlu1 %v1390_v21, %s4657_s28  ;;  %v3997_v23 = vpop.f32.mrb[13].mxu1 }
 0x525   :  { %v1542_v24 = vpop.f32.mrb[14].mxu1 }
 0x526   :  { %1566 = vrot.lane.b32.xlu1 %v1542_v24, %s4658_s15  ;;  %v4007_v25 = vpop.f32.mrb[15].mxu1 }
 0x58b   :  { %v1549_v26 = vpop.permute.xlu0 %1548 }
 0x58c   :  { %v1570_v29 = vsel %vm243_vm2, %v1010_v1, %v1549_v26 }
 0x58f   :  { %v1557_v27 = vpop.permute.xlu0 %1556 }
 0x590   :  { %v1551_v28 = vpop.permute.xlu1 %1550  ;;  %v1573_v30 = vsel %vm1572_vm3, %v1570_v29, %v1557_v27 }
 0x591   :  { %v1571_v34 = vsel %vm243_vm2, %v1086_v63, %v1551_v28 }
 0x593   :  { %v1565_v31 = vpop.permute.xlu0 %1564 }
 0x594   :  { %v1559_v32 = vpop.permute.xlu1 %1558  ;;  %v1576_v33 = vsel %vm1575_vm4, %v1573_v30, %v1565_v31 }
 0x595   :  { %4016 = vmatprep.mubr.msk.f32.mxu0 %vm145_vm0, %v1576_v33  ;;  %v1574_v35 = vsel %vm1572_vm3, %v1571_v34, %v1559_v32 }
 0x598   :  { %v1567_v36 = vpop.permute.xlu1 %1566 }
 0x599   :  { %v1577_v37 = vsel %vm1575_vm4, %v1574_v35, %v1567_v36  ;;  %v1698_v35 = vsub.s32 4, %v5062_v39  ;;  %v1704_v36 = vsub.s32 5, %v5062_v39 }
 0x59a   :  { %4017 = vmatmul.mubr.msk.f32.vlgmr.msra.gmra.mrb[18].mxu0 %vm145_vm0, %v1577_v37 }
 0x59b   :  { %4038 = vmatprep.mubr.msk.f32.mxu0 %vm4653_vm1, %v4650_v10  ;;  %4226 = vmatpush3.bf16.msra.mxu0 %v4225_v53  ;;  %v1699_v37 = vrot.slane %v5065_v41, %v1698_v35 }
 0x59c   :  { %4227 = vmatprep.subr.bf16.mxu0 %v4659_v52 }
 0x59f   :  { %4229 = vmatpush3.bf16.msra.mxu0 %v4228_v55 }
 0x5a0   :  { %4238 = vmatprep.subr.bf16.mxu0 %v4659_v52 }
 0x66d   :  { %v4018_v43 = vpop.f32.mrb[18].mxu0 }
 0x66e   :  { %v1664_v18 = vadd.f32 %v4018_v43, %v1585_v42  ;;  %v1658_v19 = vpop.f32.mrb[19].mxu0  ;;  %v1705_v43 = vrot.slane %v5065_v41, %v1704_v36 }
 0x66f   :  { %v1659_v44 = vadd.f32 %v1658_v19, %v1585_v42 }
 0x670   :  { %v1668_v45 = vadd.f32 %v1664_v18, %v4859_v7  ;;  %v130_v7 = vld [vmem:[#allocation5 + $0x8] sm:$0xff] }
 0x671   :  { %v1667_v46 = vadd.f32 %v1659_v44, %v4855_v5  ;;  %v129_v5 = vld [vmem:[#allocation5] sm:$0xff] }
 0x672   :  { %v1672_v47 = vsel %vm145_vm0, %v1668_v45, 0.0  ;;  %4039 = vmatmul.mubr.msk.f32.vlgmr.msra.gmra.mrb[20].mxu0 %vm145_vm0, %v129_v5 }
 0x673   :  { %1673 = vadd.xlane.f32.xlu1 %v1672_v47  ;;  %v1669_v48 = vsel %vm145_vm0, %v1667_v46, 0.0  ;;  %4041 = vmatprep.mubr.msk.f32.mxu0 %vm4653_vm1, %v4650_v10 }
 0x674   :  { %1670 = vadd.xlane.f32.xlu0 %v1669_v48 }
 0x676   :  { %4042 = vmatmul.mubr.msk.f32.gmra.mrb[22].mxu0 %vm145_vm0, %v130_v7 }
 0x677   :  { %4044 = vmatprep.mubr.msk.f32.mxu0 %vm4653_vm1, %v4650_v10 }
 0x67a   :  { %4045 = vmatmul.mubr.msk.f32.gmra.mrb[24].mxu0 %vm145_vm0, %v131_v56 }
 0x67b   :  { %4065 = vmatprep.mubr.msk.f32.mxu0 %vm4653_vm1, %v4650_v10 }
 0x700   :  { %v1674_v57 = vpop.xlane.xlu1 %1673 }
 0x701   :  { %v1677_v58 = vmul.f32 0.03125, %v1674_v57  ;;  %v1671_v59 = vpop.xlane.xlu0 %1670 }
 0x702   :  { %v1676_v60 = vmul.f32 0.03125, %v1671_v59 }
 0x703   :  { %v1679_v61 = vsub.f32 %v1668_v45, %v1677_v58 }
 0x704   :  { %v1678_v62 = vsub.f32 %v1667_v46, %v1676_v60 }
 0x705   :  { %v1681_v1 = vmul.f32 %v1679_v61, %v1679_v61 }
 0x706   :  { %v1680_v63 = vmul.f32 %v1678_v62, %v1678_v62 }
 0x707   :  { %v1685_v2 = vsel %vm145_vm0, %v1681_v1, 0.0 }
 0x708   :  { %v1682_v0 = vsel %vm145_vm0, %v1680_v63, 0.0 }
 0x709   :  { %1683 = vadd.xlane.f32.xlu0 %v1682_v0 }
 0x70d   :  { %1686 = vadd.xlane.f32.xlu0 %v1685_v2 }
 0x745   :  { %v1883_v13 = vpop.f32.mrb[20].mxu0 }
 0x746   :  { %v1884_v14 = vadd.f32 %v3739_v12, %v1883_v13  ;;  %v4040_v15 = vpop.f32.mrb[21].mxu0 }
 0x748   :  { %1917 = vrot.lane.b32.xlu1 %v1884_v14, %s4652_s19  ;;  %v1914_v16 = vcombine.high %v1884_v14, %v1884_v14 }
 0x749   :  { %v1888_v17 = vpop.f32.mrb[22].mxu0 }
 0x74a   :  { %v5105_v20 = vadd.f32 %v3739_v12, %v1888_v17  ;;  %v4043_v21 = vpop.f32.mrb[23].mxu0  ;;  %1919 = vrot.lane.b32.xlu0 %v1914_v16, %s4652_s19  ;;  %v5108_v22 = vcombine.low %v1884_v14, %v1914_v16 }
 0x74c   :  { %v5112_v23 = vcombine.high %v5105_v20, %v5105_v20  ;;  %v4231_v47 = vpack.c.bf16 %v5105_v20, %v5108_v22 }
 0x74d   :  { %v1893_v24 = vpop.f32.mrb[24].mxu0 }
 0x74e   :  { %1923 = vrot.lane.b32.xlu1 %v5112_v23, %s4652_s19  ;;  %v5116_v25 = vadd.f32 %v3739_v12, %v1893_v24  ;;  %v4046_v26 = vpop.f32.mrb[25].mxu0  ;;  %v1715_v12 = vrot.slane %v5065_v41, %v1714_v11 }
 0x750   :  { %v5120_v27 = vcombine.high %v5116_v25, %v5116_v25  ;;  %v5182_v13 = vcombine.low %v5112_v23, %v5116_v25 }
 0x752   :  { %1925 = vrot.lane.b32.xlu1 %v5116_v25, %s4652_s19  ;;  %v5126_v28 = vpack.i.bf16 %v5120_v27, %v5105_v20  ;;  %v4235_v21 = vpack.c.bf16 %v5120_v27, %v5182_v13 }
 0x754   :  { %4347 = vrot.lane.b32.xlu0 %v5126_v28, %s4652_s19 }
 0x756   :  { %1929 = vrot.lane.b32.xlu1 %v1884_v14, %s4651_s2 }
 0x758   :  { %1931 = vrot.lane.b32.xlu0 %v1914_v16, %s4651_s2 }
 0x75a   :  { %1935 = vrot.lane.b32.xlu1 %v5112_v23, %s4651_s2 }
 0x75c   :  { %1937 = vrot.lane.b32.xlu0 %v5116_v25, %s4651_s2 }
 0x75e   :  { %4352 = vrot.lane.b32.xlu1 %v5126_v28, %s4651_s2 }
 0x760   :  { %1941 = vrot.lane.b32.xlu0 %v1884_v14, %s4654_s3 }
 0x762   :  { %1943 = vrot.lane.b32.xlu1 %v1914_v16, %s4654_s3 }
 0x796   :  { %v1684_v29 = vpop.xlane.xlu0 %1683 }
 0x797   :  { %v1688_v30 = vmul.f32 0.03125, %v1684_v29 }
 0x799   :  { %v1690_v31 = vadd.f32 1e-05, %v1688_v30 }
 0x79a   :  { %v1687_v32 = vpop.xlane.xlu0 %1686 }
 0x79b   :  { %4433 = vrsqrt.f32 %v1690_v31  ;;  %v1689_v33 = vmul.f32 0.03125, %v1687_v32 }
 0x79d   :  { %v1691_v34 = vadd.f32 1e-05, %v1689_v33 }
 0x79f   :  { %4435 = vrsqrt.f32 %v1691_v34 }
 0x7a5   :  { %v4434_v38 = vpop.eup %4433 }
 0x7a6   :  { %v1694_v42 = vmul.f32 %v4434_v38, %v1678_v62 }
 0x7a8   :  { %v1700_v18 = vmul.f32 %v1699_v37, %v1694_v42 }
 0x7a9   :  { %v4436_v19 = vpop.eup %4435 }
 0x7aa   :  { %v1695_v44 = vmul.f32 %v4436_v19, %v1679_v61  ;;  %v5144_v45 = vadd.f32 %v1705_v43, %v1700_v18 }
 0x7ac   :  { %v1701_v46 = vmul.f32 %v1699_v37, %v1695_v44  ;;  %4027 = vmatprep.mubr.msk.f32.mxu1 %vm145_vm0, %v5144_v45 }
 0x7ae   :  { %v5150_v48 = vadd.f32 %v1705_v43, %v1701_v46 }
 0x7b0   :  { %4028 = vmatmul.mubr.msk.f32.vlgmr.msra.gmra.mrb[16].mxu1 %vm145_vm0, %v5150_v48 }
 0x7b1   :  { %4233 = vmatpush3.bf16.xpose.msk.msra.mxu1 %vm5154_vm5, %v4231_v47  ;;  %4051 = vmatprep.mubr.msk.f32.mxu1 %vm4653_vm1, %v4650_v10 }
 0x7b2   :  { %4234 = vmatprep.subr.bf16.mxu1 %v4659_v52 }
 0x7ba   :  { %v1918_v50 = vpop.permute.xlu1 %1917 }
 0x7bc   :  { %v1920_v51 = vpop.permute.xlu0 %1919 }
 0x7bd   :  { %v2107_v53 = vcombine.low %v1918_v50, %v1920_v51 }
 0x7c0   :  { %v1924_v54 = vpop.permute.xlu1 %1923 }
 0x7c4   :  { %v1926_v58 = vpop.permute.xlu1 %1925 }
 0x7c5   :  { %v2184_v59 = vcombine.low %v1924_v54, %v1926_v58 }
 0x7c6   :  { %v4348_v55 = vpop.permute.xlu0 %4347 }
 0x7c7   :  { %v4349_v5 = vunpack.i.l.bf16 %v4348_v55  ;;  %v4350_v7 = vunpack.i.h.bf16 %v4348_v55 }
 0x7c8   :  { %v1930_v61 = vpop.permute.xlu1 %1929 }
 0x7c9   :  { %v4239_v56 = vpack.c.bf16 %v4349_v5, %v2107_v53  ;;  %v5165_v57 = vpack.i.bf16 %v4349_v5, %v2107_v53  ;;  %v5170_v60 = vpack.i.bf16 %v4350_v7, %v2184_v59  ;;  %v4243_v24 = vpack.c.bf16 %v4350_v7, %v2184_v59 }
 0x7ca   :  { %v1932_v62 = vpop.permute.xlu0 %1931 }
 0x7cb   :  { %4241 = vmatpush3.bf16.xpose.msk.msra.mxu0 %vm5154_vm5, %v4239_v56  ;;  %v2261_v1 = vcombine.low %v1930_v61, %v1932_v62 }
 0x7cc   :  { %4246 = vmatprep.subr.bf16.mxu0 %v4659_v52  ;;  %v1936_v63 = vpop.permute.xlu1 %1935 }
 0x7ce   :  { %v1938_v0 = vpop.permute.xlu0 %1937 }
 0x7cf   :  { %v2338_v2 = vcombine.low %v1936_v63, %v1938_v0 }
 0x7d0   :  { %v4353_v3 = vpop.permute.xlu1 %4352 }
 0x7d1   :  { %v4355_v4 = vunpack.i.h.bf16 %v4353_v3  ;;  %v4354_v6 = vunpack.i.l.bf16 %v4353_v3 }
 0x7d3   :  { %v5172_v8 = vpack.i.bf16 %v4354_v6, %v2261_v1  ;;  %v5174_v9 = vpack.i.bf16 %v4355_v4, %v2338_v2  ;;  %v4251_v26 = vpack.c.bf16 %v4355_v4, %v2338_v2  ;;  %v4247_v30 = vpack.c.bf16 %v4354_v6, %v2261_v1 }
 0x883   :  { %v4029_v14 = vpop.f32.mrb[16].mxu1 }
 0x884   :  { %v1794_v15 = vadd.f32 %v4029_v14, %v1715_v12  ;;  %v1788_v16 = vpop.f32.mrb[17].mxu1 }
 0x885   :  { %v1789_v17 = vadd.f32 %v1788_v16, %v1715_v12 }
 0x886   :  { %1901 = vrot.lane.b32.xlu1 %v1794_v15, %s4652_s19 }
 0x887   :  { %1899 = vrot.lane.b32.xlu0 %v1789_v17, %s4652_s19  ;;  %4052 = vmatmul.mubr.msk.f32.vlgmr.msra.gmra.mrb[18].mxu1 %vm243_vm2, %v1789_v17 }
 0x888   :  { %4237 = vmatpush3.bf16.xpose.msk.msra.mxu1 %vm5154_vm5, %v4235_v21  ;;  %4058 = vmatprep.mubr.msk.f32.mxu1 %vm4653_vm1, %v4650_v10  ;;  %v4361_v21 = vpack.i.bf16 %v5105_v20, %v5108_v22 }
 0x889   :  { %4242 = vmatprep.subr.bf16.mxu1 %v4659_v52 }
 0x88a   :  { %1949 = vrot.lane.b32.xlu1 %v5116_v25, %s4654_s3  ;;  %v1942_v25 = vpop.permute.xlu0 %1941 }
 0x88b   :  { %1947 = vrot.lane.b32.xlu0 %v5112_v23, %s4654_s3  ;;  %v1944_v23 = vpop.permute.xlu1 %1943 }
 0x88c   :  { %v2415_v35 = vcombine.low %v1942_v25, %v1944_v23 }
 0x88e   :  { %1903 = vrot.lane.b32.xlu1 %v1789_v17, %s4651_s2 }
 0x88f   :  { %4059 = vmatmul.mubr.msk.f32.vlgmr.msra.gmra.mrb[20].mxu1 %vm243_vm2, %v1794_v15  ;;  %4357 = vrot.lane.b32.xlu0 %v5126_v28, %s4654_s3 }
 0x890   :  { %4245 = vmatpush3.bf16.xpose.msk.msra.mxu1 %vm5154_vm5, %v4243_v24  ;;  %4072 = vmatprep.mubr.msk.f32.mxu1 %vm4653_vm1, %v4650_v10 }
 0x891   :  { %4250 = vmatprep.subr.bf16.mxu1 %v4659_v52 }
 0x892   :  { %1907 = vrot.lane.b32.xlu1 %v1789_v17, %s4654_s3  ;;  %v4366_v17 = vpack.i.bf16 %v5120_v27, %v5182_v13 }
 0x893   :  { %1905 = vrot.lane.b32.xlu0 %v1794_v15, %s4651_s2 }
 0x897   :  { %1909 = vrot.lane.b32.xlu0 %v1794_v15, %s4654_s3 }
 0x8f8   :  { %v1902_v29 = vpop.permute.xlu1 %1901 }
 0x8f9   :  { %v1900_v28 = vpop.permute.xlu0 %1899  ;;  %4073 = vmatmul.mubr.msk.f32.vlgmr.msra.gmra.mrb[22].mxu1 %vm243_vm2, %v1902_v29 }
 0x8fa   :  { %4253 = vmatpush3.bf16.xpose.msk.msra.mxu1 %vm5154_vm5, %v4251_v26  ;;  %4066 = vmatmul.mubr.msk.f32.vlgmr.msra.gmra.mrb[26].mxu0 %vm243_vm2, %v1900_v28 }
 0x8fb   :  { %4249 = vmatpush3.bf16.xpose.msk.msra.mxu0 %vm5154_vm5, %v4247_v30  ;;  %4079 = vmatprep.mubr.msk.f32.mxu0 %vm4653_vm1, %v4650_v10 }
 0x8fc   :  { %v1950_v31 = vpop.permute.xlu1 %1949  ;;  %4086 = vmatprep.mubr.msk.f32.mxu1 %vm4653_vm1, %v4650_v10  ;;  %4254 = vmatprep.subr.bf16.mxu0 %v4659_v52 }
 0x8fd   :  { %v1948_v32 = vpop.permute.xlu0 %1947  ;;  %4258 = vmatprep.subr.bf16.mxu1 %v4659_v52 }
 0x8fe   :  { %v2492_v36 = vcombine.low %v1948_v32, %v1950_v31 }
 0x900   :  { %v1904_v33 = vpop.permute.xlu1 %1903 }
 0x901   :  { %v4358_v34 = vpop.permute.xlu0 %4357 }
 0x902   :  { %v4360_v37 = vunpack.i.h.bf16 %v4358_v34  ;;  %v4359_v38 = vunpack.i.l.bf16 %v4358_v34  ;;  %4080 = vmatmul.mubr.msk.f32.vlgmr.msra.gmra.mrb[28].mxu0 %vm243_vm2, %v1904_v33 }
 0x903   :  { %4093 = vmatprep.mubr.msk.f32.mxu0 %vm4653_vm1, %v4650_v10 }
 0x904   :  { %v4259_v42 = vpack.c.bf16 %v4360_v37, %v2492_v36  ;;  %v5225_v43 = vpack.i.bf16 %v4360_v37, %v2492_v36  ;;  %v4255_v18 = vpack.c.bf16 %v4359_v38, %v2415_v35  ;;  %v5227_v19 = vpack.i.bf16 %v4359_v38, %v2415_v35  ;;  %v1908_v46 = vpop.permute.xlu1 %1907 }
 0x905   :  { %v1906_v44 = vpop.permute.xlu0 %1905 }
 0x906   :  { %4087 = vmatmul.mubr.msk.f32.vlgmr.msra.gmra.mrb[24].mxu1 %vm243_vm2, %v1906_v44  ;;  %4257 = vmatpush3.bf16.xpose.msk.msra.mxu0 %vm5154_vm5, %v4255_v18 }
 0x907   :  { %4261 = vmatpush3.bf16.xpose.msk.msra.mxu1 %vm5154_vm5, %v4259_v42  ;;  %4100 = vmatprep.mubr.msk.f32.mxu1 %vm4653_vm1, %v4650_v10 }
 0x908   :  { %4262 = vmatprep.subr.bf16.mxu0 %v4659_v52  ;;  %4270 = vmatprep.subr.bf16.mxu1 %v4659_v52 }
 0x909   :  { %v1910_v47 = vpop.permute.xlu0 %1909 }
 0x90d   :  { %4094 = vmatmul.mubr.msk.f32.vlgmr.msra.gmra.mrb[30].mxu0 %vm243_vm2, %v1908_v46 }
 0x90e   :  { %4101 = vmatmul.mubr.msk.f32.vlgmr.msra.gmra.mrb[26].mxu1 %vm243_vm2, %v1910_v47  ;;  %4107 = vmatprep.mubr.msk.f32.mxu0 %vm4653_vm1, %v4650_v10 }
 0x90f   :  { %4121 = vmatprep.mubr.msk.f32.mxu1 %vm4653_vm1, %v4650_v10 }
 0x95a   :  { %v2026_v49 = vpop.f32.mrb[18].mxu1 }
 0x95b   :  { %v4053_v50 = vpop.f32.mrb[19].mxu1  ;;  %v2570_v51 = vsel %vm2569_vm6, %v2026_v49, -inf }
 0x95c   :  { %2571 = vmax.xlane.f32.xlu1 %v2570_v51 }
 0x962   :  { %v2103_v53 = vpop.f32.mrb[20].mxu1 }
 0x963   :  { %v4060_v54 = vpop.f32.mrb[21].mxu1  ;;  %v2573_v55 = vsel %vm2569_vm6, %v2103_v53, -inf }
 0x964   :  { %2574 = vmax.xlane.f32.xlu0 %v2573_v55 }
 0x9cc   :  { %v2257_v5 = vpop.f32.mrb[22].mxu1 }
 0x9cd   :  { %v2180_v7 = vpop.f32.mrb[26].mxu0  ;;  %v4074_v56 = vpop.f32.mrb[23].mxu1  ;;  %v2579_v58 = vsel %vm2569_vm6, %v2257_v5, -inf }
 0x9ce   :  { %2580 = vmax.xlane.f32.xlu1 %v2579_v58  ;;  %v4067_v59 = vpop.f32.mrb[27].mxu0  ;;  %v2576_v61 = vsel %vm2569_vm6, %v2180_v7, -inf }
 0x9cf   :  { %2577 = vmax.xlane.f32.xlu0 %v2576_v61 }
 0x9d5   :  { %v2334_v62 = vpop.f32.mrb[28].mxu0 }
 0x9d6   :  { %v4081_v63 = vpop.f32.mrb[29].mxu0  ;;  %v2582_v0 = vsel %vm2569_vm6, %v2334_v62, -inf }
 0x9d7   :  { %2583 = vmax.xlane.f32.xlu0 %v2582_v0 }
 0x9d9   :  { %v2411_v1 = vpop.f32.mrb[24].mxu1 }
 0x9da   :  { %v4088_v2 = vpop.f32.mrb[25].mxu1  ;;  %v2585_v3 = vsel %vm2569_vm6, %v2411_v1, -inf }
 0x9db   :  { %2586 = vmax.xlane.f32.xlu1 %v2585_v3 }
 0x9e0   :  { %v2488_v4 = vpop.f32.mrb[30].mxu0 }
 0x9e1   :  { %v2565_v6 = vpop.f32.mrb[26].mxu1  ;;  %v4095_v12 = vpop.f32.mrb[31].mxu0  ;;  %v2588_v14 = vsel %vm2569_vm6, %v2488_v4, -inf }
 0x9e2   :  { %v4102_v15 = vpop.f32.mrb[27].mxu1  ;;  %v2591_v16 = vsel %vm2569_vm6, %v2565_v6, -inf  ;;  %2589 = vmax.xlane.f32.xlu0 %v2588_v14 }
 0x9e3   :  { %2592 = vmax.xlane.f32.xlu1 %v2591_v16 }
 0x9e9   :  { %v2572_v27 = vpop.xlane.xlu1 %2571 }
 0x9ea   :  { %v2594_v24 = vsub.f32 %v2026_v49, %v2572_v27 }
 0x9ec   :  { %v2602_v25 = vmul.f32 1.442695, %v2594_v24 }
 0x9ee   :  { %4437 = vpow2.f32 %v2602_v25 }
 0x9f1   :  { %v2575_v13 = vpop.xlane.xlu0 %2574 }
 0x9f2   :  { %v2595_v23 = vsub.f32 %v2103_v53, %v2575_v13 }
 0x9f4   :  { %4367 = vrot.lane.b32.xlu1 %v4366_v17, %s4655_s23  ;;  %v2604_v20 = vmul.f32 1.442695, %v2595_v23 }
 0x9f6   :  { %4439 = vpow2.f32 %v2604_v20 }
 0x9f8   :  { %4372 = vrot.lane.b32.xlu1 %v5165_v57, %s4655_s23  ;;  %4362 = vrot.lane.b32.xlu0 %v4361_v21, %s4655_s23  ;;  %v5266_v22 = vpop.eup %4437 }
 0x9fc   :  { %4382 = vrot.lane.b32.xlu1 %v5172_v8, %s4655_s23  ;;  %4377 = vrot.lane.b32.xlu0 %v5170_v60, %s4655_s23  ;;  %v2618_v8 = vsel %vm2569_vm6, %v5266_v22, 0.0 }
 0xa00   :  { %4387 = vrot.lane.b32.xlu0 %v5174_v9, %s4655_s23  ;;  %v5268_v57 = vpop.eup %4439 }
 0xa01   :  { %v2621_v60 = vsel %vm2569_vm6, %v5268_v57, 0.0 }
 0xa1f   :  { %2619 = vadd.xlane.f32.xlu0 %v2618_v8 }
 0xa20   :  { %2622 = vadd.xlane.f32.xlu1 %v2621_v60 }
 0xa5b   :  { %v2581_v9 = vpop.xlane.xlu1 %2580 }
 0xa5c   :  { %v2597_v26 = vsub.f32 %v2257_v5, %v2581_v9  ;;  %v2578_v29 = vpop.xlane.xlu0 %2577 }
 0xa5d   :  { %v2596_v30 = vsub.f32 %v2180_v7, %v2578_v29 }
 0xa5e   :  { %v2608_v28 = vmul.f32 1.442695, %v2597_v26 }
 0xa5f   :  { %v2606_v31 = vmul.f32 1.442695, %v2596_v30 }
 0xa60   :  { %4441 = vpow2.f32 %v2608_v28 }
 0xa61   :  { %4443 = vpow2.f32 %v2606_v31 }
 0xa64   :  { %v2584_v32 = vpop.xlane.xlu0 %2583 }
 0xa65   :  { %v2598_v33 = vsub.f32 %v2334_v62, %v2584_v32 }
 0xa67   :  { %v2610_v34 = vmul.f32 1.442695, %v2598_v33 }
 0xa68   :  { %v2587_v35 = vpop.xlane.xlu1 %2586 }
 0xa69   :  { %4445 = vpow2.f32 %v2610_v34  ;;  %v2599_v36 = vsub.f32 %v2411_v1, %v2587_v35 }
 0xa6a   :  { %v5274_v37 = vpop.eup %4441 }
 0xa6b   :  { %v5276_v38 = vpop.eup %4443  ;;  %v2612_v42 = vmul.f32 1.442695, %v2599_v36  ;;  %v2627_v18 = vsel %vm2569_vm6, %v5274_v37, 0.0 }
 0xa6c   :  { %2628 = vadd.xlane.f32.xlu1 %v2627_v18  ;;  %v2624_v44 = vsel %vm2569_vm6, %v5276_v38, 0.0 }
 0xa6d   :  { %4447 = vpow2.f32 %v2612_v42  ;;  %2625 = vadd.xlane.f32.xlu0 %v2624_v44 }
 0xa6f   :  { %v2590_v46 = vpop.xlane.xlu0 %2589 }
 0xa70   :  { %v2593_v47 = vpop.xlane.xlu1 %2592  ;;  %v2600_v49 = vsub.f32 %v2488_v4, %v2590_v46 }
 0xa71   :  { %v2601_v50 = vsub.f32 %v2565_v6, %v2593_v47 }
 0xa72   :  { %v2614_v51 = vmul.f32 1.442695, %v2600_v49 }
 0xa73   :  { %v5282_v53 = vpop.eup %4445  ;;  %v2616_v54 = vmul.f32 1.442695, %v2601_v50  ;;  %v4363_v55 = vpop.permute.xlu0 %4362 }
 0xa74   :  { %4449 = vpow2.f32 %v2614_v51  ;;  %v4368_v5 = vpop.permute.xlu1 %4367  ;;  %v4365_v7 = vunpack.i.h.bf16 %v4363_v55  ;;  %v4364_v56 = vunpack.i.l.bf16 %v4363_v55  ;;  %v2630_v58 = vsel %vm2569_vm6, %v5282_v53, 0.0 }
 0xa75   :  { %4451 = vpow2.f32 %v2616_v54  ;;  %2631 = vadd.xlane.f32.xlu0 %v2630_v58  ;;  %v4370_v13 = vunpack.i.h.bf16 %v4368_v5  ;;  %v4369_v24 = vunpack.i.l.bf16 %v4368_v5 }
 0xa76   :  { %v4263_v61 = vpack.c.bf16 %v4365_v7, %v4364_v56 }
 0xa77   :  { %v5290_v62 = vpop.eup %4447  ;;  %v4378_v15 = vpop.permute.xlu0 %4377  ;;  %v4267_v8 = vpack.c.bf16 %v4370_v13, %v4369_v24 }
 0xa78   :  { %v4373_v63 = vpop.permute.xlu1 %4372  ;;  %4265 = vmatpush3.bf16.msk.msra.mxu0 %vm5286_vm9, %v4263_v61  ;;  %v2633_v0 = vsel %vm2569_vm6, %v5290_v62, 0.0  ;;  %v4380_v60 = vunpack.i.h.bf16 %v4378_v15  ;;  %v4379_v9 = vunpack.i.l.bf16 %v4378_v15 }
 0xa79   :  { %v4375_v1 = vunpack.i.h.bf16 %v4373_v63  ;;  %v4374_v2 = vunpack.i.l.bf16 %v4373_v63  ;;  %2634 = vadd.xlane.f32.xlu1 %v2633_v0  ;;  %4266 = vmatprep.subr.bf16.mxu0 %v4659_v52 }
 0xa7b   :  { %v4271_v3 = vpack.c.bf16 %v4375_v1, %v4374_v2  ;;  %v4388_v16 = vpop.permute.xlu0 %4387 }
 0xa7c   :  { %v4383_v17 = vpop.permute.xlu1 %4382  ;;  %v4390_v29 = vunpack.i.h.bf16 %v4388_v16  ;;  %v4389_v30 = vunpack.i.l.bf16 %v4388_v16  ;;  %v3331_v16 = vld [vmem:[#allocation8 + $0x10] sm:$0xff] }
 0xa7d   :  { %4273 = vmatpush3.bf16.msk.msra.mxu1 %vm5286_vm9, %v4271_v3  ;;  %v4385_v28 = vunpack.i.h.bf16 %v4383_v17  ;;  %v4384_v31 = vunpack.i.l.bf16 %v4383_v17  ;;  %v3329_v3 = vld [vmem:[#allocation8] sm:$0xff] }
 0xa7e   :  { %v5299_v4 = vpop.eup %4449  ;;  %4278 = vmatprep.subr.bf16.mxu1 %v4659_v52  ;;  %v4283_v35 = vpack.c.bf16 %v4390_v29, %v4389_v30 }
 0xa7f   :  { %v5302_v6 = vpop.eup %4451  ;;  %v2636_v12 = vsel %vm2569_vm6, %v5299_v4, 0.0  ;;  %v4279_v18 = vpack.c.bf16 %v4385_v28, %v4384_v31 }
 0xa80   :  { %2637 = vadd.xlane.f32.xlu0 %v2636_v12  ;;  %v2639_v14 = vsel %vm2569_vm6, %v5302_v6, 0.0  ;;  %v3330_v12 = vld [vmem:[#allocation8 + $0x8] sm:$0xff] }
 0xa81   :  { %2640 = vadd.xlane.f32.xlu1 %v2639_v14  ;;  %v4294_v15 = vpack.c.bf16 %v3330_v12, %v3329_v3  ;;  %v3556_v12 = vld [vmem:[%s5448_s11 + $0x20] sm:$0xff] }
 0xa92   :  { %4392 = vrot.lane.b32.xlu1 %v5227_v19, %s4655_s23  ;;  %v4275_v19 = vpack.c.bf16 %v4380_v60, %v4379_v9 }
 0xa96   :  { %4397 = vrot.lane.b32.xlu0 %v5225_v43, %s4655_s23 }
 0xaac   :  { %v2620_v21 = vpop.xlane.xlu0 %2619 }
 0xaad   :  { %4453 = vrcp.f32 %v2620_v21  ;;  %v2623_v27 = vpop.xlane.xlu1 %2622 }
 0xaae   :  { %4455 = vrcp.f32 %v2623_v27 }
 0xab7   :  { %v4454_v23 = vpop.eup %4453 }
 0xab8   :  { %v2650_v25 = vmul.f32 %v4454_v23, %v5266_v22  ;;  %v4456_v20 = vpop.eup %4455 }
 0xab9   :  { %v2651_v43 = vmul.f32 %v4456_v20, %v5268_v57 }
 0xaba   :  { %4108 = vmatmul.mubr.msk.f32.vlgmr.msra.gmra.mrb[32].mxu0 %vm2569_vm6, %v2650_v25 }
 0xabb   :  { %4269 = vmatpush3.bf16.msk.msra.mxu0 %vm5286_vm9, %v4267_v8  ;;  %4114 = vmatprep.mubr.msk.f32.mxu0 %vm4653_vm1, %v4650_v10 }
 0xabc   :  { %4274 = vmatprep.subr.bf16.mxu0 %v4659_v52 }
 0xabe   :  { %4115 = vmatmul.mubr.msk.f32.vlgmr.msra.gmra.mrb[34].mxu0 %vm2569_vm6, %v2651_v43 }
 0xabf   :  { %4277 = vmatpush3.bf16.msk.msra.mxu0 %vm5286_vm9, %v4275_v19  ;;  %4128 = vmatprep.mubr.msk.f32.mxu0 %vm4653_vm1, %v4650_v10 }
 0xac0   :  { %4282 = vmatprep.subr.bf16.mxu0 %v4659_v52 }
 0xaf9   :  { %v2629_v22 = vpop.xlane.xlu1 %2628 }
 0xafa   :  { %4457 = vrcp.f32 %v2629_v22  ;;  %v2626_v26 = vpop.xlane.xlu0 %2625 }
 0xafb   :  { %4459 = vrcp.f32 %v2626_v26 }
 0xb02   :  { %v2632_v57 = vpop.xlane.xlu0 %2631 }
 0xb03   :  { %4461 = vrcp.f32 %v2632_v57 }
 0xb04   :  { %v4458_v32 = vpop.eup %4457 }
 0xb05   :  { %v4460_v33 = vpop.eup %4459  ;;  %v2653_v34 = vmul.f32 %v4458_v32, %v5274_v37 }
 0xb06   :  { %v2652_v36 = vmul.f32 %v4460_v33, %v5276_v38  ;;  %v2635_v42 = vpop.xlane.xlu1 %2634  ;;  %v3335_v33 = vsub.s32 2, %v5062_v39 }
 0xb07   :  { %4463 = vrcp.f32 %v2635_v42  ;;  %4129 = vmatmul.mubr.msk.f32.vlgmr.msra.gmra.mrb[36].mxu0 %vm2569_vm6, %v2653_v34 }
 0xb08   :  { %4285 = vmatpush3.bf16.msk.msra.mxu0 %vm5286_vm9, %v4283_v35  ;;  %4122 = vmatmul.mubr.msk.f32.vlgmr.msra.gmra.mrb[28].mxu1 %vm2569_vm6, %v2652_v36  ;;  %v3336_v34 = vrot.slane %v5065_v41, %v3335_v33 }
 0xb09   :  { %4281 = vmatpush3.bf16.msk.msra.mxu1 %vm5286_vm9, %v4279_v18  ;;  %4135 = vmatprep.mubr.msk.f32.mxu1 %vm4653_vm1, %v4650_v10 }
 0xb0a   :  { %4142 = vmatprep.mubr.msk.f32.mxu0 %vm4653_vm1, %v4650_v10  ;;  %4286 = vmatprep.subr.bf16.mxu1 %v4659_v52 }
 0xb0b   :  { %4290 = vmatprep.subr.bf16.mxu0 %v4659_v52 }
 0xb0d   :  { %v4462_v37 = vpop.eup %4461  ;;  %v2638_v38 = vpop.xlane.xlu0 %2637 }
 0xb0e   :  { %v2654_v44 = vmul.f32 %v4462_v37, %v5282_v53  ;;  %4465 = vrcp.f32 %v2638_v38  ;;  %v2641_v46 = vpop.xlane.xlu1 %2640 }
 0xb0f   :  { %4467 = vrcp.f32 %v2641_v46 }
 0xb10   :  { %4136 = vmatmul.mubr.msk.f32.vlgmr.msra.gmra.mrb[30].mxu1 %vm2569_vm6, %v2654_v44 }
 0xb11   :  { %v4464_v47 = vpop.eup %4463  ;;  %v4398_v49 = vpop.permute.xlu0 %4397  ;;  %4149 = vmatprep.mubr.msk.f32.mxu1 %vm4653_vm1, %v4650_v10 }
 0xb12   :  { %v2655_v50 = vmul.f32 %v4464_v47, %v5290_v62  ;;  %v4400_v51 = vunpack.i.h.bf16 %v4398_v49  ;;  %v4399_v54 = vunpack.i.l.bf16 %v4398_v49  ;;  %v4393_v55 = vpop.permute.xlu1 %4392 }
 0xb13   :  { %v4395_v52 = vunpack.i.h.bf16 %v4393_v55  ;;  %v4394_v5 = vunpack.i.l.bf16 %v4393_v55 }
 0xb14   :  { %v4291_v7 = vpack.c.bf16 %v4400_v51, %v4399_v54  ;;  %4143 = vmatmul.mubr.msk.f32.vlgmr.msra.gmra.mrb[38].mxu0 %vm2569_vm6, %v2655_v50 }
 0xb15   :  { %v4287_v53 = vpack.c.bf16 %v4395_v52, %v4394_v5  ;;  %4156 = vmatprep.mubr.msk.f32.mxu0 %vm4653_vm1, %v4650_v10 }
 0xb16   :  { %4293 = vmatpush3.bf16.msk.msra.mxu0 %vm5286_vm9, %v4291_v7 }
 0xb17   :  { %4289 = vmatpush3.bf16.msk.msra.mxu1 %vm5286_vm9, %v4287_v53  ;;  %v3459_v53 = vld [vmem:[#allocation10 + $0x8] sm:$0xff] }
 0xb18   :  { %v4466_v56 = vpop.eup %4465  ;;  %4295 = vmatprep.subr.bf16.mxu1 %v4294_v15 }
 0xb19   :  { %v4468_v58 = vpop.eup %4467  ;;  %v2656_v61 = vmul.f32 %v4466_v56, %v5299_v4  ;;  %v3332_v4 = vld [vmem:[#allocation8 + $0x18] sm:$0xff] }
 0xb1a   :  { %v2657_v62 = vmul.f32 %v4468_v58, %v5302_v6  ;;  %v4298_v17 = vpack.c.bf16 %v3332_v4, %v3331_v16  ;;  %v3460_v58 = vld [vmem:[#allocation10 + $0x10] sm:$0xff] }
 0xb1b   :  { %4150 = vmatmul.mubr.msk.f32.vlgmr.msra.gmra.mrb[32].mxu1 %vm2569_vm6, %v2656_v61  ;;  %v3461_v61 = vld [vmem:[#allocation10 + $0x18] sm:$0xff] }
 0xb1c   :  { %4157 = vmatmul.mubr.msk.f32.vlgmr.msra.gmra.mrb[40].mxu0 %vm2569_vm6, %v2657_v62  ;;  %4297 = vmatpush3.bf16.msra.mxu1 %v4294_v15  ;;  %v4306_v62 = vpack.c.bf16 %v3461_v61, %v3460_v58 }
 0xb1d   :  { %4299 = vmatprep.subr.bf16.mxu1 %v4298_v17 }
 0xb20   :  { %4301 = vmatpush3.bf16.msra.mxu1 %v4298_v17 }
 0xb8d   :  { %v2735_v63 = vpop.f32.mrb[32].mxu0 }
 0xb8e   :  { %v4109_v0 = vpop.f32.mrb[33].mxu0 }
 0xb8f   :  { %v3553_v0 = vld [vmem:[%s5448_s11 + $0x8] sm:$0xff] }
 0xb91   :  { %v2815_v1 = vpop.f32.mrb[34].mxu0 }
 0xb92   :  { %v4116_v10 = vpop.f32.mrb[35].mxu0 }
 0xbda   :  { %v2975_v2 = vpop.f32.mrb[36].mxu0 }
 0xbdb   :  { %3303 = vrot.lane.b32.xlu0 %v2975_v2, %s4645_s21  ;;  %v2895_v59 = vpop.f32.mrb[28].mxu1  ;;  %v4130_v14 = vpop.f32.mrb[37].mxu0  ;;  %v3555_v2 = vld [vmem:[%s5448_s11 + $0x18] sm:$0xff] }
 0xbdc   :  { %3301 = vrot.lane.b32.xlu1 %v2895_v59, %s4645_s21  ;;  %v4123_v6 = vpop.f32.mrb[29].mxu1  ;;  %v3557_v59 = vld [vmem:[%s5448_s11 + $0x28] sm:$0xff] }
 0xbdd   :  { %v4318_v14 = vpack.c.bf16 %v3557_v59, %v3556_v12 }
 0xbe3   :  { %v3055_v21 = vpop.f32.mrb[30].mxu1 }
 0xbe4   :  { %3309 = vrot.lane.b32.xlu1 %v3055_v21, %s4657_s28  ;;  %v4137_v27 = vpop.f32.mrb[31].mxu1 }
 0xbe5   :  { %v3448_v27 = vsub.s32 6, %v5062_v39 }
 0xbe7   :  { %v3135_v13 = vpop.f32.mrb[38].mxu0 }
 0xbe8   :  { %3311 = vrot.lane.b32.xlu0 %v3135_v13, %s4657_s28  ;;  %v4144_v24 = vpop.f32.mrb[39].mxu0  ;;  %v3454_v13 = vsub.s32 7, %v5062_v39 }
 0xbe9   :  { %v3449_v24 = vrot.slane %v5065_v41, %v3448_v27 }
 0xbee   :  { %v3215_v23 = vpop.f32.mrb[32].mxu1 }
 0xbef   :  { %v3295_v25 = vpop.f32.mrb[40].mxu0  ;;  %3317 = vrot.lane.b32.xlu1 %v3215_v23, %s4658_s15  ;;  %v4151_v20 = vpop.f32.mrb[33].mxu1 }
 0xbf0   :  { %3319 = vrot.lane.b32.xlu0 %v3295_v25, %s4658_s15  ;;  %v4158_v8 = vpop.f32.mrb[41].mxu0 }
 0xc4d   :  { %v3304_v9 = vpop.permute.xlu0 %3303 }
 0xc4e   :  { %v3302_v60 = vpop.permute.xlu1 %3301  ;;  %v3324_v26 = vsel %vm243_vm2, %v2815_v1, %v3304_v9  ;;  %v3554_v1 = vld [vmem:[%s5448_s11 + $0x10] sm:$0xff] }
 0xc4f   :  { %v3323_v22 = vsel %vm243_vm2, %v2735_v63, %v3302_v60  ;;  %v3552_v63 = vld [vmem:[%s5448_s11] sm:$0xff]  ;;  %v4314_v3 = vpack.c.bf16 %v3555_v2, %v3554_v1  ;;  %v3455_v60 = vrot.slane %v5065_v41, %v3454_v13 }
 0xc50   :  { %v4310_v10 = vpack.c.bf16 %v3553_v0, %v3552_v63  ;;  %v3785_v41 = vld [vmem:[%s5447_s10] ss:$0 sm:$0xff]  ;;  %s4661_s10 = smov [#allocation13]  }
 0xc52   :  { %4311 = vmatprep.subr.bf16.mxu1 %v4310_v10 }
 0xc56   :  { %v3310_v43 = vpop.permute.xlu1 %3309 }
 0xc57   :  { %v3325_v29 = vsel %vm1572_vm3, %v3323_v22, %v3310_v43 }
 0xc5a   :  { %v3312_v19 = vpop.permute.xlu0 %3311 }
 0xc5b   :  { %v3326_v57 = vsel %vm1572_vm3, %v3324_v26, %v3312_v19  ;;  %v3558_v26 = vld [vmem:[%s5448_s11 + $0x30] sm:$0xff] }
 0xc61   :  { %v3318_v30 = vpop.permute.xlu1 %3317 }
 0xc62   :  { %v3320_v28 = vpop.permute.xlu0 %3319  ;;  %v3327_v31 = vsel %vm1575_vm4, %v3325_v29, %v3318_v30  ;;  %v3559_v29 = vld [vmem:[%s5448_s11 + $0x38] sm:$0xff]  ;;  %s3693_s11 = sshll.u32 %s4661_s10, 4  ;;  %s3694_s11 = int_to_ptr.vmem [resolvable:$true] %s3693_s11 }
 0xc63   :  { %v3328_v32 = vsel %vm1575_vm4, %v3326_v57, %v3320_v28  ;;  %4167 = vmatprep.mubr.msk.f32.mxu1 %vm145_vm0, %v3327_v31  ;;  %v4322_v30 = vpack.c.bf16 %v3559_v29, %v3558_v26  ;;  %s4610_s1 = scalar_lea.vmem %s3694_s11, 256  ;;  %p4615_p7 = scmp.lt.s32.totalorder %s3694_s11, %s3694_s11 }
 0xc64   :  { %4168 = vmatmul.mubr.msk.f32.vlgmr.msra.gmra.mrb[34].mxu1 %vm145_vm0, %v3328_v32  ;;  %p4611_p6 = scmp.ne.s32.totalorder %s3694_s11, %s4610_s1  ;;  %p4616_p8 = scmp.lt.s32.totalorder %s4610_s1, %s4610_s1 }
 0xc65   :  { %4313 = vmatpush3.bf16.msra.mxu1 %v4310_v10  ;;  %v133_v10 = vld [vmem:[#allocation11 + $0x8] sm:$0x3] }
 0xc66   :  { %4315 = vmatprep.subr.bf16.mxu1 %v4314_v3  ;;  %v3677_v2 = vrot.slane %v133_v10, %v1584_v40  ;;  %v3683_v59 = vrot.slane %v133_v10, %v1714_v11  ;;  %p4617_p9 = por %p4616_p8, %p4615_p7 }
 0xc68   :  { %p4618_p10 = pnand %p4617_p9, %p4611_p6 }
 0xc69   :  { %4317 = vmatpush3.bf16.msra.mxu1 %v4314_v3 }
 0xc6a   :  { %4319 = vmatprep.subr.bf16.mxu1 %v4318_v14 }
 0xc6d   :  { %4321 = vmatpush3.bf16.msra.mxu1 %v4318_v14 }
 0xc6e   :  { %4323 = vmatprep.subr.bf16.mxu1 %v4322_v30 }
 0xc71   :  { %4325 = vmatpush3.bf16.msra.mxu1 %v4322_v30 }
 0xd37   :  { %v4169_v35 = vpop.f32.mrb[34].mxu1 }
 0xd38   :  { %v3415_v36 = vadd.f32 %v4169_v35, %v3336_v34  ;;  %v3409_v42 = vpop.f32.mrb[35].mxu1  ;;  %v3562_v35 = vsub.s32 3, %v5062_v39 }
 0xd39   :  { %v3410_v18 = vadd.f32 %v3409_v42, %v3336_v34 }
 0xd3a   :  { %v3419_v37 = vadd.f32 %v3415_v36, %v5150_v48  ;;  %v4477_v36 = vld [vmem:[#allocation11] sm:$0xff] }
 0xd3b   :  { %v3418_v38 = vadd.f32 %v3410_v18, %v5144_v45  ;;  %v3458_v45 = vld [vmem:[#allocation10] sm:$0xff]  ;;  %v3563_v42 = vrot.slane %v4477_v36, %v3562_v35 }
 0xd3c   :  { %v3423_v44 = vsel %vm145_vm0, %v3419_v37, 0.0  ;;  %v4302_v56 = vpack.c.bf16 %v3459_v53, %v3458_v45 }
 0xd3d   :  { %3424 = vadd.xlane.f32.xlu0 %v3423_v44  ;;  %v3420_v46 = vsel %vm145_vm0, %v3418_v38, 0.0 }
 0xd3e   :  { %3421 = vadd.xlane.f32.xlu1 %v3420_v46  ;;  %4303 = vmatprep.subr.bf16.mxu0 %v4302_v56 }
 0xd3f   :  { %4305 = vmatpush3.bf16.msra.mxu0 %v4302_v56 }
 0xd40   :  { %4307 = vmatprep.subr.bf16.mxu0 %v4306_v62 }
 0xd43   :  { %4309 = vmatpush3.bf16.msra.mxu0 %v4306_v62 }
 0xdca   :  { %v3425_v47 = vpop.xlane.xlu0 %3424 }
 0xdcb   :  { %v3427_v49 = vmul.f32 0.03125, %v3425_v47  ;;  %v3422_v50 = vpop.xlane.xlu1 %3421 }
 0xdcc   :  { %v3426_v51 = vmul.f32 0.03125, %v3422_v50 }
 0xdcd   :  { %v3429_v54 = vsub.f32 %v3419_v37, %v3427_v49 }
 0xdce   :  { %v3428_v55 = vsub.f32 %v3418_v38, %v3426_v51 }
 0xdcf   :  { %v3431_v52 = vmul.f32 %v3429_v54, %v3429_v54 }
 0xdd0   :  { %v3430_v5 = vmul.f32 %v3428_v55, %v3428_v55 }
 0xdd1   :  { %v3435_v7 = vsel %vm145_vm0, %v3431_v52, 0.0 }
 0xdd2   :  { %3436 = vadd.xlane.f32.xlu1 %v3435_v7  ;;  %v3432_v48 = vsel %vm145_vm0, %v3430_v5, 0.0 }
 0xdd3   :  { %3433 = vadd.xlane.f32.xlu0 %v3432_v48 }
 0xe5f   :  { %v3437_v15 = vpop.xlane.xlu1 %3436 }
 0xe60   :  { %v3439_v16 = vmul.f32 0.03125, %v3437_v15  ;;  %v3434_v4 = vpop.xlane.xlu0 %3433 }
 0xe61   :  { %v3438_v6 = vmul.f32 0.03125, %v3434_v4 }
 0xe62   :  { %v3441_v17 = vadd.f32 1e-05, %v3439_v16 }
 0xe63   :  { %v3440_v21 = vadd.f32 1e-05, %v3438_v6 }
 0xe64   :  { %4469 = vrsqrt.f32 %v3441_v17 }
 0xe65   :  { %4471 = vrsqrt.f32 %v3440_v21 }
 0xe6e   :  { %v4470_v23 = vpop.eup %4469 }
 0xe6f   :  { %v4472_v25 = vpop.eup %4471  ;;  %v3445_v20 = vmul.f32 %v4470_v23, %v3429_v54 }
 0xe70   :  { %v3444_v8 = vmul.f32 %v4472_v25, %v3428_v55 }
 0xe71   :  { %v3451_v9 = vmul.f32 %v3449_v24, %v3445_v20 }
 0xe72   :  { %v3450_v43 = vmul.f32 %v3449_v24, %v3444_v8 }
 0xe73   :  { %v3457_v22 = vadd.f32 %v3455_v60, %v3451_v9 }
 0xe74   :  { %v3456_v19 = vadd.f32 %v3455_v60, %v3450_v43 }
 0xe76   :  { %4178 = vmatprep.mubr.msk.f32.mxu0 %vm145_vm0, %v3456_v19 }
 0xe77   :  { %4179 = vmatmul.mubr.msk.f32.vlgmr.msra.gmra.mrb[42].mxu0 %vm145_vm0, %v3457_v22 }
 0xf4a   :  { %v4180_v57 = vpop.f32.mrb[42].mxu0 }
 0xf4b   :  { %v3547_v28 = vadd.f32 %v4180_v57, %v3785_v41  ;;  %v3541_v31 = vpop.f32.mrb[43].mxu0 }
 0xf4c   :  { %v3542_v32 = vadd.f32 %v3785_v41, %v3541_v31 }
 0xf4d   :  { %v3551_v34 = vmax.f32 %v3547_v28, 0.0 }
 0xf4e   :  { %v3550_v33 = vmax.f32 %v3542_v32, 0.0 }
 0xf50   :  { %4197 = vmatprep.mubr.msk.f32.mxu1 %vm3564_vm10, %v3550_v33 }
 0xf51   :  { %4198 = vmatmul.mubr.msk.f32.vlgmr.msra.gmra.mrb[36].mxu1 %vm3564_vm10, %v3551_v34 }
0x1024   :  { %v4199_v18 = vpop.f32.mrb[36].mxu1 }
0x1025   :  { %v3643_v37 = vadd.f32 %v4199_v18, %v3563_v42  ;;  %v3637_v38 = vpop.f32.mrb[37].mxu1 }
0x1026   :  { %v3638_v44 = vadd.f32 %v3637_v38, %v3563_v42 }
0x1027   :  { %v3647_v46 = vadd.f32 %v3643_v37, %v3457_v22 }
0x1028   :  { %v3646_v47 = vadd.f32 %v3638_v44, %v3456_v19 }
0x1029   :  { %v3651_v49 = vsel %vm145_vm0, %v3647_v46, 0.0 }
0x102a   :  { %3652 = vadd.xlane.f32.xlu1 %v3651_v49  ;;  %v3648_v50 = vsel %vm145_vm0, %v3646_v47, 0.0 }
0x102b   :  { %3649 = vadd.xlane.f32.xlu0 %v3648_v50 }
0x10b7   :  { %v3653_v51 = vpop.xlane.xlu1 %3652 }
0x10b8   :  { %v3655_v54 = vmul.f32 0.03125, %v3653_v51  ;;  %v3650_v55 = vpop.xlane.xlu0 %3649 }
0x10b9   :  { %v3654_v52 = vmul.f32 0.03125, %v3650_v55 }
0x10ba   :  { %v3657_v5 = vsub.f32 %v3647_v46, %v3655_v54 }
0x10bb   :  { %v3656_v7 = vsub.f32 %v3646_v47, %v3654_v52 }
0x10bc   :  { %v3659_v48 = vmul.f32 %v3657_v5, %v3657_v5 }
0x10bd   :  { %v3658_v45 = vmul.f32 %v3656_v7, %v3656_v7 }
0x10be   :  { %v3663_v53 = vsel %vm145_vm0, %v3659_v48, 0.0 }
0x10bf   :  { %3664 = vadd.xlane.f32.xlu1 %v3663_v53  ;;  %v3660_v56 = vsel %vm145_vm0, %v3658_v45, 0.0 }
0x10c0   :  { %3661 = vadd.xlane.f32.xlu0 %v3660_v56 }
0x114c   :  { %v3665_v58 = vpop.xlane.xlu1 %3664 }
0x114d   :  { %v3667_v61 = vmul.f32 0.03125, %v3665_v58  ;;  %v3662_v62 = vpop.xlane.xlu0 %3661 }
0x114e   :  { %v3666_v63 = vmul.f32 0.03125, %v3662_v62 }
0x114f   :  { %v3669_v0 = vadd.f32 1e-05, %v3667_v61 }
0x1150   :  { %v3668_v1 = vadd.f32 1e-05, %v3666_v63 }
0x1151   :  { %4473 = vrsqrt.f32 %v3669_v0 }
0x1152   :  { %4475 = vrsqrt.f32 %v3668_v1 }
0x115b   :  { %v4474_v3 = vpop.eup %4473 }
0x115c   :  { %v4476_v12 = vpop.eup %4475  ;;  %v3673_v14 = vmul.f32 %v4474_v3, %v3657_v5 }
0x115d   :  { %v3672_v15 = vmul.f32 %v4476_v12, %v3656_v7 }
0x115e   :  { %v3679_v16 = vmul.f32 %v3677_v2, %v3673_v14 }
0x115f   :  { %v3678_v4 = vmul.f32 %v3677_v2, %v3672_v15 }
0x1160   :  { %v3685_v6 = vadd.f32 %v3683_v59, %v3679_v16 }
0x1161   :  { %v3684_v17 = vadd.f32 %v3683_v59, %v3678_v4 }
0x1162   :  { %3687 = vst.msk [vmem:[#allocation13 + $0x8] sm:$0xff] %vm145_vm0, %v3685_v6 }
0x1163   :  { %3686 = vst.msk [vmem:[#allocation13] sm:$0xff] %vm145_vm0, %v3684_v17 }
0x1164   :  { %4621 = shalt.err (!%p4618_p10)
}
0x1165   :  { %s4622_s12 = scalar_lea.hbm %s5450_s13, 256 }
0x1166   :  { %p4623_p11 = scmp.ne.s32.totalorder %s5450_s13, %s4622_s12  ;;  %p4626_p12 = scmp.lt.u32.totalorder %s4622_s12, %s5450_s13 }
0x1168   :  { %p4628_p13 = pnand %p4626_p12, %p4623_p11 }
0x116a   :  { %4631 = shalt.err (!%p4628_p13)
}
0x116b   :  { %3699 = dma.vmem_to_hbm [thread:$0]  %s3694_s11, 256, %s5450_s13, [#allocation4], %s4644_s20, %s4644_s20, %s4645_s21  }
0x116c   :  { %4640 = dma.done.wait [#allocation4], 256  }
0x116d   :  { %4641 = vsyncadd [#allocation4], 4294967040 }
0x116e   :  { %3703 = vsyncpa [#allocation3], 1 }
0x116f   :  { %3704 = vsyncpa [#allocation6], 1 }
0x1170   :  { %3705 = vsyncpa [#allocation9], 1 }
0x1171   :  { %3706 = vsyncpa [#allocation12], 1 }
0x1172   :  { %3707 = vsyncpa [#allocation4], 1 }

</bundles_post_ra>
